<compile_context>
chip_gen: v7x
topology: tpu7x:2x2x1
jax: 0.10.0
libtpu: 0.0.40
codegen_flags: <defaults>
</compile_context>

<pallas_src>
import functools

import jax
import jax.numpy as jnp
from jax.experimental import pallas as pl
from jax.experimental.pallas import tpu as pltpu

# Explicit scoped-VMEM budget: above v5e's 16 MiB default, still safe on v7x
# (64 MiB physical).
VMEM_LIMIT_BYTES = 48 * 1024 * 1024


def _round_up(x, m):
    return ((x + m - 1) // m) * m


def _row_tile(s_pad, desired):
    """Largest 128-aligned tile in {desired, 256, 128} dividing s_pad, else full."""
    for t in (desired, 256, 128):
        if s_pad % t == 0:
            return t
    return s_pad  # full (padded) dim -> always a legal block shape


def _padded_seq(s):
    # >256: pad to a multiple of 256 so q/kv tiles of 256 divide it exactly.
    # <=256: single tile; just round rows up to the sublane multiple of 8.
    return _round_up(s, 256) if s > 256 else _round_up(s, 8)


# --------------------------------------------------------------------------
# Kernel 1: fused qkv projection + head split (+ K pre-transpose).
#   x block (1, ts, C) -> q/v blocks (nh, ts, hd), k block (nh, hd, ts)
# --------------------------------------------------------------------------
def _qkv_split_kernel(x_ref, wq_ref, wk_ref, wv_ref, bq_ref, bk_ref, bv_ref,
                      q_ref, k_ref, v_ref, *, num_heads, head_dim):
    x = x_ref[0]                                                   # (ts, C)

    # Three separate matmuls: live fp32 temporary is (ts, C), not (ts, 3C).
    yq = jnp.dot(x, wq_ref[...], preferred_element_type=jnp.float32) + bq_ref[...]
    for h in range(num_heads):                                     # static unroll
        q_ref[h] = yq[:, h * head_dim:(h + 1) * head_dim].astype(q_ref.dtype)

    yk = jnp.dot(x, wk_ref[...], preferred_element_type=jnp.float32) + bk_ref[...]
    yk_t = yk.T                                 # one XLU transpose per row tile
    for h in range(num_heads):                  # sublane (not lane) slices
        k_ref[h] = yk_t[h * head_dim:(h + 1) * head_dim, :].astype(k_ref.dtype)

    yv = jnp.dot(x, wv_ref[...], preferred_element_type=jnp.float32) + bv_ref[...]
    for h in range(num_heads):
        v_ref[h] = yv[:, h * head_dim:(h + 1) * head_dim].astype(v_ref.dtype)


def qkv_split_project(x_seq, wq, wk, wv, bq, bk, bv, num_heads, *,
                      single_buffer_weights=True):
    """x_seq: (B, S_pad, C) -> q,v: (B*nh, S_pad, hd), k: (B*nh, hd, S_pad)."""
    B, S_pad, C = x_seq.shape
    head_dim = C // num_heads
    ts = _row_tile(S_pad, 512)
    grid = (B, S_pad // ts)

    def _w_spec(shape):
        idx = lambda b, si: (0,) * len(shape)
        if single_buffer_weights:
            # Constant index_map -> one resident buffer is enough.
            return pl.BlockSpec(shape, idx, pipeline_mode=pl.Buffered(1))
        return pl.BlockSpec(shape, idx)

    qv_sd = jax.ShapeDtypeStruct((B * num_heads, S_pad, head_dim), x_seq.dtype)
    k_sd = jax.ShapeDtypeStruct((B * num_heads, head_dim, S_pad), x_seq.dtype)
    qv_spec = pl.BlockSpec((num_heads, ts, head_dim), lambda b, si: (b, si, 0))
    k_spec = pl.BlockSpec((num_heads, head_dim, ts), lambda b, si: (b, 0, si))

    return pl.pallas_call(
        functools.partial(_qkv_split_kernel,
                          num_heads=num_heads, head_dim=head_dim),
        out_shape=(qv_sd, k_sd, qv_sd),
        grid=grid,
        in_specs=[
            pl.BlockSpec((1, ts, C), lambda b, si: (b, si, 0)),    # x rows
            _w_spec((C, C)), _w_spec((C, C)), _w_spec((C, C)),     # W_q, W_k, W_v
            _w_spec((1, C)), _w_spec((1, C)), _w_spec((1, C)),     # biases
        ],
        out_specs=(qv_spec, k_spec, qv_spec),
        compiler_params=pltpu.CompilerParams(
            dimension_semantics=("parallel", "parallel"),
            vmem_limit_bytes=VMEM_LIMIT_BYTES),
    )(x_seq, wq, wk, wv, bq, bk, bv)


# --------------------------------------------------------------------------
# Kernel 2: flash attention (online softmax) fused with the output projection.
# --------------------------------------------------------------------------
def _flash_proj_kernel(q_ref, k_ref, v_ref, wp_ref, bp_ref, out_ref,
                       m_ref, l_ref, acc_ref, *, num_heads, kv_tile,
                       seq_len, seq_pad):
    ki = pl.program_id(2)

    @pl.when(ki == 0)
    def _():
        m_ref[...] = jnp.full(m_ref.shape, -jnp.inf, dtype=jnp.float32)
        l_ref[...] = jnp.zeros(l_ref.shape, dtype=jnp.float32)
        acc_ref[...] = jnp.zeros(acc_ref.shape, dtype=jnp.float32)

    q = q_ref[...]                          # (nh, tq, d)   scale folded into W_q
    k = k_ref[...]                          # (nh, d, tk)   pre-transposed
    v = v_ref[...]                          # (nh, tk, d)

    # Contraction over d with K already transposed -> plain batched matmul.
    s = jnp.einsum("hqd,hdk->hqk", q, k,
                   preferred_element_type=jnp.float32)             # (nh, tq, tk)

    if seq_pad != seq_len:                  # static: mask padded-out keys
        key_idx = ki * kv_tile + jax.lax.broadcasted_iota(
            jnp.int32, (1, 1, kv_tile), 2)
        s = jnp.where(key_idx < seq_len, s, -1e30)

    m_prev = m_ref[...]
    m_new = jnp.maximum(m_prev, jnp.max(s, axis=-1, keepdims=True))
    alpha = jnp.exp(m_prev - m_new)
    p = jnp.exp(s - m_new)
    l_ref[...] = alpha * l_ref[...] + jnp.sum(p, axis=-1, keepdims=True)

    # bf16 probabilities / values + fp32 accumulation: fast MXU path on all gens.
    p16 = p.astype(jnp.bfloat16)
    v16 = v if v.dtype == jnp.bfloat16 else v.astype(jnp.bfloat16)
    acc_ref[...] = alpha * acc_ref[...] + jnp.einsum(
        "hqk,hkd->hqd", p16, v16, preferred_element_type=jnp.float32)
    m_ref[...] = m_new

    @pl.when(ki == pl.num_programs(2) - 1)
    def _():
        inv_l = pl.reciprocal(l_ref[...], approx=True)      # divide on the EUP
        o = acc_ref[...] * inv_l                             # (nh, tq, d) fp32
        # Merge heads in VMEM and apply the output projection -> lane-dense
        # (tq, C) HBM write; no separate merge/projection kernel.
        ocat = jnp.concatenate([o[h] for h in range(num_heads)], axis=-1)
        y = jnp.dot(ocat.astype(wp_ref.dtype), wp_ref[...],
                    preferred_element_type=jnp.float32) + bp_ref[...]
        out_ref[0] = y.astype(out_ref.dtype)


def flash_attention_proj(q, k, v, w_proj, b_proj, num_heads, seq_len, *,
                         single_buffer_weights=True):
    """q,v: (B*nh, S_pad, d), k: (B*nh, d, S_pad) -> (B, S_pad, C)."""
    bh, s_pad, d = q.shape
    B = bh // num_heads
    C = num_heads * d
    tq = _row_tile(s_pad, 256)
    tk = _row_tile(s_pad, 256)
    grid = (B, s_pad // tq, s_pad // tk)

    def _w_spec(shape):
        idx = lambda b, qi, ki: (0,) * len(shape)
        if single_buffer_weights:
            return pl.BlockSpec(shape, idx, pipeline_mode=pl.Buffered(1))
        return pl.BlockSpec(shape, idx)

    return pl.pallas_call(
        functools.partial(_flash_proj_kernel, num_heads=num_heads,
                          kv_tile=tk, seq_len=seq_len, seq_pad=s_pad),
        out_shape=jax.ShapeDtypeStruct((B, s_pad, C), q.dtype),
        grid=grid,
        in_specs=[
            pl.BlockSpec((num_heads, tq, d), lambda b, qi, ki: (b, qi, 0)),
            pl.BlockSpec((num_heads, d, tk), lambda b, qi, ki: (b, 0, ki)),
            pl.BlockSpec((num_heads, tk, d), lambda b, qi, ki: (b, ki, 0)),
            _w_spec((C, C)),                                   # W_proj (resident)
            _w_spec((1, C)),                                   # b_proj
        ],
        out_specs=pl.BlockSpec((1, tq, C), lambda b, qi, ki: (b, qi, 0)),
        scratch_shapes=[
            pltpu.VMEM((num_heads, tq, 1), jnp.float32),       # running max m
            pltpu.VMEM((num_heads, tq, 1), jnp.float32),       # running sum l
            pltpu.VMEM((num_heads, tq, d), jnp.float32),       # accumulator
        ],
        compiler_params=pltpu.CompilerParams(
            dimension_semantics=("parallel", "parallel", "arbitrary"),
            vmem_limit_bytes=VMEM_LIMIT_BYTES),
    )(q, k, v, w_proj, b_proj)


# --------------------------------------------------------------------------
# One-time parameter preparation (outside the per-call forward).
# --------------------------------------------------------------------------
def prepare_params(params, num_heads, compute_dtype):
    """Split qkv weights, fold 1/sqrt(head_dim) into the Q slice BEFORE casting."""
    C = params["w_proj_t"].shape[0]
    head_dim = C // num_heads
    scale = head_dim ** (-0.5)
    w = params["w_qkv_t"].astype(jnp.float32)
    b = params["b_qkv"].astype(jnp.float32)
    return {
        "w_q": (w[:, 0 * C:1 * C] * scale).astype(compute_dtype),
        "w_k": w[:, 1 * C:2 * C].astype(compute_dtype),
        "w_v": w[:, 2 * C:3 * C].astype(compute_dtype),
        "b_q": (b[0 * C:1 * C] * scale).reshape(1, C).astype(jnp.float32),
        "b_k": b[1 * C:2 * C].reshape(1, C).astype(jnp.float32),
        "b_v": b[2 * C:3 * C].reshape(1, C).astype(jnp.float32),
        "w_proj": params["w_proj_t"].astype(compute_dtype),
        "b_proj": params["b_proj"].reshape(1, C).astype(jnp.float32),
    }


def _call_weight_buffered(fn, *args, **kwargs):
    # pipeline_mode=pl.Buffered(1) (single-buffer the resident weights) is a
    # newer Pallas feature; fall back to default double buffering if this JAX
    # build rejects it, so the kernel always runs.
    try:
        return fn(*args, single_buffer_weights=True, **kwargs)
    except Exception:
        return fn(*args, single_buffer_weights=False, **kwargs)


# --------------------------------------------------------------------------
# Full module forward.
# --------------------------------------------------------------------------
def multihead_attention(x, prepped, num_heads):
    """x: (B, H, W, C) -> (B, H, W, C). use_rel_pos=False path of the module."""
    B, H, W, C = x.shape
    S = H * W
    s_pad = _padded_seq(S)

    x_seq = x.reshape(B, S, C)                      # free, no data movement
    if s_pad != S:
        x_seq = jnp.pad(x_seq, ((0, 0), (0, s_pad - S), (0, 0)))

    q, k, v = _call_weight_buffered(
        qkv_split_project, x_seq,
        prepped["w_q"], prepped["w_k"], prepped["w_v"],
        prepped["b_q"], prepped["b_k"], prepped["b_v"], num_heads)

    # TODO(synk): use_rel_pos (add_decomposed_rel_pos) not implemented — module default is False.
    out = _call_weight_buffered(
        flash_attention_proj, q, k, v,
        prepped["w_proj"], prepped["b_proj"], num_heads, S)

    if s_pad != S:
        out = out[:, :S, :]
    return out.reshape(B, H, W, C)


# --------------------------------------------------------------------------
# Pure-JAX reference mirroring the PyTorch module.
# --------------------------------------------------------------------------
def reference(x, params, num_heads):
    B, H, W, C = x.shape
    S = H * W
    head_dim = C // num_heads
    scale = head_dim ** (-0.5)

    qkv = x.reshape(B * S, C) @ params["w_qkv_t"] + params["b_qkv"]
    qkv = qkv.reshape(B, S, 3, num_heads, head_dim)
    qkv = jnp.transpose(qkv, (2, 0, 3, 1, 4)).reshape(3, B * num_heads, S, head_dim)
    q, k, v = qkv[0], qkv[1], qkv[2]
    attn = (q * scale) @ jnp.swapaxes(k, -2, -1)
    attn = jax.nn.softmax(attn, axis=-1)
    o = attn @ v
    o = o.reshape(B, num_heads, H, W, head_dim)
    o = jnp.transpose(o, (0, 2, 3, 1, 4)).reshape(B * S, C)
    out = o @ params["w_proj_t"] + params["b_proj"]
    return out.reshape(B, H, W, C)


if __name__ == "__main__":
    # Small, module-consistent shapes: dim=32, num_heads=4, 8x8 spatial input.
    B, H, W, C = 2, 8, 8, 32
    num_heads = 4

    key = jax.random.PRNGKey(0)
    kx, kw1, kb1, kw2, kb2 = jax.random.split(key, 5)

    x = jax.random.normal(kx, (B, H, W, C), dtype=jnp.float32)

    # nn.Linear-equivalent params, pre-transposed to (in, out).
    params = {
        "w_qkv_t": jax.random.normal(kw1, (C, 3 * C), dtype=jnp.float32) * 0.05,
        "b_qkv": jax.random.normal(kb1, (3 * C,), dtype=jnp.float32) * 0.02,
        "w_proj_t": jax.random.normal(kw2, (C, C), dtype=jnp.float32) * 0.05,
        "b_proj": jax.random.normal(kb2, (C,), dtype=jnp.float32) * 0.02,
    }

    prepped = prepare_params(params, num_heads, compute_dtype=x.dtype)

    out = jax.block_until_ready(multihead_attention(x, prepped, num_heads))
    ref = jax.block_until_ready(reference(x, params, num_heads))

    assert out.shape == (B, H, W, C)
    # Tolerance relaxed for the deliberate fast paths: bf16 probabilities/values
    # in the PV matmul and pl.reciprocal(approx=True) in the softmax finalize.
    assert jnp.allclose(out, ref, atol=2e-2, rtol=2e-2), "mismatch vs reference"

    print("KERNEL_OK")
</pallas_src>

<mosaic_0001>
module attributes {stable_mosaic.version = 11 : i64} {
  func.func @_qkv_split_kernel(%arg0: i32, %arg1: i32, %arg2: memref<1x64x32xf32, #tpu.memory_space<vmem>>, %arg3: memref<32x32xf32, #tpu.memory_space<vmem>>, %arg4: memref<32x32xf32, #tpu.memory_space<vmem>>, %arg5: memref<32x32xf32, #tpu.memory_space<vmem>>, %arg6: memref<1x32xf32, #tpu.memory_space<vmem>>, %arg7: memref<1x32xf32, #tpu.memory_space<vmem>>, %arg8: memref<1x32xf32, #tpu.memory_space<vmem>>, %arg9: memref<4x64x8xf32, #tpu.memory_space<vmem>>, %arg10: memref<4x8x64xf32, #tpu.memory_space<vmem>>, %arg11: memref<4x64x8xf32, #tpu.memory_space<vmem>>) attributes {dimension_semantics = [#tpu.dimension_semantics<parallel>, #tpu.dimension_semantics<parallel>], iteration_bounds = array<i64: 2, 1>, scalar_prefetch = 0 : i64, scratch_operands = 0 : i64, tpu.core_type = #tpu.core_type<tc>, window_params = [{transform_indices = @transform_0, window_bounds = array<i64: 1, 64, 32>}, {pipeline_mode = #tpu.pipeline_mode<synchronous>, transform_indices = @transform_1, window_bounds = array<i64: 32, 32>}, {pipeline_mode = #tpu.pipeline_mode<synchronous>, transform_indices = @transform_2, window_bounds = array<i64: 32, 32>}, {pipeline_mode = #tpu.pipeline_mode<synchronous>, transform_indices = @transform_3, window_bounds = array<i64: 32, 32>}, {pipeline_mode = #tpu.pipeline_mode<synchronous>, transform_indices = @transform_4, window_bounds = array<i64: 1, 32>}, {pipeline_mode = #tpu.pipeline_mode<synchronous>, transform_indices = @transform_5, window_bounds = array<i64: 1, 32>}, {pipeline_mode = #tpu.pipeline_mode<synchronous>, transform_indices = @transform_6, window_bounds = array<i64: 1, 32>}, {transform_indices = @transform_7, window_bounds = array<i64: 4, 64, 8>}, {transform_indices = @transform_8, window_bounds = array<i64: 4, 8, 64>}, {transform_indices = @transform_9, window_bounds = array<i64: 4, 64, 8>}]} {
    %c0 = arith.constant 0 : index
    %c0_0 = arith.constant 0 : index
    %c0_1 = arith.constant 0 : index
    %0 = vector.load %arg2[%c0, %c0_0, %c0_1] : memref<1x64x32xf32, #tpu.memory_space<vmem>>, vector<1x64x32xf32>
    %1 = vector.shape_cast %0 : vector<1x64x32xf32> to vector<64x32xf32>
    %c0_2 = arith.constant 0 : index
    %c0_3 = arith.constant 0 : index
    %2 = vector.load %arg3[%c0_2, %c0_3] : memref<32x32xf32, #tpu.memory_space<vmem>>, vector<32x32xf32>
    %cst = arith.constant dense<0.000000e+00> : vector<64x32xf32>
    %3 = tpu.matmul %1, %2, %cst {dimension_numbers = #tpu.dot_dimension_numbers<[1], [0], [0], [1], [0, 0, 1, 1], [], []>} : vector<64x32xf32>, vector<32x32xf32>, vector<64x32xf32> -> vector<64x32xf32>
    %c0_4 = arith.constant 0 : index
    %c0_5 = arith.constant 0 : index
    %4 = vector.load %arg6[%c0_4, %c0_5] : memref<1x32xf32, #tpu.memory_space<vmem>>, vector<1x32xf32>
    %5 = vector.broadcast %4 : vector<1x32xf32> to vector<64x32xf32>
    %6 = arith.addf %3, %5 : vector<64x32xf32>
    %7 = vector.extract_strided_slice %6 {offsets = [0, 0], sizes = [64, 8], strides = [1, 1]} : vector<64x32xf32> to vector<64x8xf32>
    %c0_6 = arith.constant 0 : index
    %c0_7 = arith.constant 0 : index
    %c0_8 = arith.constant 0 : index
    %8 = vector.load %arg9[%c0_6, %c0_7, %c0_8] : memref<4x64x8xf32, #tpu.memory_space<vmem>>, vector<1x64x8xf32>
    %9 = vector.shape_cast %8 : vector<1x64x8xf32> to vector<64x8xf32>
    %10 = vector.shape_cast %7 : vector<64x8xf32> to vector<1x64x8xf32>
    tpu.vector_store %arg9[%c0_6, %c0_7, %c0_8], %10 {strides = array<i32>} : memref<4x64x8xf32, #tpu.memory_space<vmem>>, vector<1x64x8xf32>,
    %11 = vector.extract_strided_slice %6 {offsets = [0, 8], sizes = [64, 8], strides = [1, 1]} : vector<64x32xf32> to vector<64x8xf32>
    %c1 = arith.constant 1 : index
    %c0_9 = arith.constant 0 : index
    %c0_10 = arith.constant 0 : index
    %12 = vector.load %arg9[%c1, %c0_9, %c0_10] : memref<4x64x8xf32, #tpu.memory_space<vmem>>, vector<1x64x8xf32>
    %13 = vector.shape_cast %12 : vector<1x64x8xf32> to vector<64x8xf32>
    %14 = vector.shape_cast %11 : vector<64x8xf32> to vector<1x64x8xf32>
    tpu.vector_store %arg9[%c1, %c0_9, %c0_10], %14 {strides = array<i32>} : memref<4x64x8xf32, #tpu.memory_space<vmem>>, vector<1x64x8xf32>,
    %15 = vector.extract_strided_slice %6 {offsets = [0, 16], sizes = [64, 8], strides = [1, 1]} : vector<64x32xf32> to vector<64x8xf32>
    %c2 = arith.constant 2 : index
    %c0_11 = arith.constant 0 : index
    %c0_12 = arith.constant 0 : index
    %16 = vector.load %arg9[%c2, %c0_11, %c0_12] : memref<4x64x8xf32, #tpu.memory_space<vmem>>, vector<1x64x8xf32>
    %17 = vector.shape_cast %16 : vector<1x64x8xf32> to vector<64x8xf32>
    %18 = vector.shape_cast %15 : vector<64x8xf32> to vector<1x64x8xf32>
    tpu.vector_store %arg9[%c2, %c0_11, %c0_12], %18 {strides = array<i32>} : memref<4x64x8xf32, #tpu.memory_space<vmem>>, vector<1x64x8xf32>,
    %19 = vector.extract_strided_slice %6 {offsets = [0, 24], sizes = [64, 8], strides = [1, 1]} : vector<64x32xf32> to vector<64x8xf32>
    %c3 = arith.constant 3 : index
    %c0_13 = arith.constant 0 : index
    %c0_14 = arith.constant 0 : index
    %20 = vector.load %arg9[%c3, %c0_13, %c0_14] : memref<4x64x8xf32, #tpu.memory_space<vmem>>, vector<1x64x8xf32>
    %21 = vector.shape_cast %20 : vector<1x64x8xf32> to vector<64x8xf32>
    %22 = vector.shape_cast %19 : vector<64x8xf32> to vector<1x64x8xf32>
    tpu.vector_store %arg9[%c3, %c0_13, %c0_14], %22 {strides = array<i32>} : memref<4x64x8xf32, #tpu.memory_space<vmem>>, vector<1x64x8xf32>,
    %c0_15 = arith.constant 0 : index
    %c0_16 = arith.constant 0 : index
    %23 = vector.load %arg4[%c0_15, %c0_16] : memref<32x32xf32, #tpu.memory_space<vmem>>, vector<32x32xf32>
    %cst_17 = arith.constant dense<0.000000e+00> : vector<64x32xf32>
    %24 = tpu.matmul %1, %23, %cst_17 {dimension_numbers = #tpu.dot_dimension_numbers<[1], [0], [0], [1], [0, 0, 1, 1], [], []>} : vector<64x32xf32>, vector<32x32xf32>, vector<64x32xf32> -> vector<64x32xf32>
    %c0_18 = arith.constant 0 : index
    %c0_19 = arith.constant 0 : index
    %25 = vector.load %arg7[%c0_18, %c0_19] : memref<1x32xf32, #tpu.memory_space<vmem>>, vector<1x32xf32>
    %26 = vector.broadcast %25 : vector<1x32xf32> to vector<64x32xf32>
    %27 = arith.addf %24, %26 : vector<64x32xf32>
    %28 = tpu.transpose %27, [1, 0] : vector<64x32xf32> -> vector<32x64xf32>
    %29 = vector.extract_strided_slice %28 {offsets = [0, 0], sizes = [8, 64], strides = [1, 1]} : vector<32x64xf32> to vector<8x64xf32>
    %c0_20 = arith.constant 0 : index
    %c0_21 = arith.constant 0 : index
    %c0_22 = arith.constant 0 : index
    %30 = vector.load %arg10[%c0_20, %c0_21, %c0_22] : memref<4x8x64xf32, #tpu.memory_space<vmem>>, vector<1x8x64xf32>
    %31 = vector.shape_cast %30 : vector<1x8x64xf32> to vector<8x64xf32>
    %32 = vector.shape_cast %29 : vector<8x64xf32> to vector<1x8x64xf32>
    tpu.vector_store %arg10[%c0_20, %c0_21, %c0_22], %32 {strides = array<i32>} : memref<4x8x64xf32, #tpu.memory_space<vmem>>, vector<1x8x64xf32>,
    %33 = vector.extract_strided_slice %28 {offsets = [8, 0], sizes = [8, 64], strides = [1, 1]} : vector<32x64xf32> to vector<8x64xf32>
    %c1_23 = arith.constant 1 : index
    %c0_24 = arith.constant 0 : index
    %c0_25 = arith.constant 0 : index
    %34 = vector.load %arg10[%c1_23, %c0_24, %c0_25] : memref<4x8x64xf32, #tpu.memory_space<vmem>>, vector<1x8x64xf32>
    %35 = vector.shape_cast %34 : vector<1x8x64xf32> to vector<8x64xf32>
    %36 = vector.shape_cast %33 : vector<8x64xf32> to vector<1x8x64xf32>
    tpu.vector_store %arg10[%c1_23, %c0_24, %c0_25], %36 {strides = array<i32>} : memref<4x8x64xf32, #tpu.memory_space<vmem>>, vector<1x8x64xf32>,
    %37 = vector.extract_strided_slice %28 {offsets = [16, 0], sizes = [8, 64], strides = [1, 1]} : vector<32x64xf32> to vector<8x64xf32>
    %c2_26 = arith.constant 2 : index
    %c0_27 = arith.constant 0 : index
    %c0_28 = arith.constant 0 : index
    %38 = vector.load %arg10[%c2_26, %c0_27, %c0_28] : memref<4x8x64xf32, #tpu.memory_space<vmem>>, vector<1x8x64xf32>
    %39 = vector.shape_cast %38 : vector<1x8x64xf32> to vector<8x64xf32>
    %40 = vector.shape_cast %37 : vector<8x64xf32> to vector<1x8x64xf32>
    tpu.vector_store %arg10[%c2_26, %c0_27, %c0_28], %40 {strides = array<i32>} : memref<4x8x64xf32, #tpu.memory_space<vmem>>, vector<1x8x64xf32>,
    %41 = vector.extract_strided_slice %28 {offsets = [24, 0], sizes = [8, 64], strides = [1, 1]} : vector<32x64xf32> to vector<8x64xf32>
    %c3_29 = arith.constant 3 : index
    %c0_30 = arith.constant 0 : index
    %c0_31 = arith.constant 0 : index
    %42 = vector.load %arg10[%c3_29, %c0_30, %c0_31] : memref<4x8x64xf32, #tpu.memory_space<vmem>>, vector<1x8x64xf32>
    %43 = vector.shape_cast %42 : vector<1x8x64xf32> to vector<8x64xf32>
    %44 = vector.shape_cast %41 : vector<8x64xf32> to vector<1x8x64xf32>
    tpu.vector_store %arg10[%c3_29, %c0_30, %c0_31], %44 {strides = array<i32>} : memref<4x8x64xf32, #tpu.memory_space<vmem>>, vector<1x8x64xf32>,
    %c0_32 = arith.constant 0 : index
    %c0_33 = arith.constant 0 : index
    %45 = vector.load %arg5[%c0_32, %c0_33] : memref<32x32xf32, #tpu.memory_space<vmem>>, vector<32x32xf32>
    %cst_34 = arith.constant dense<0.000000e+00> : vector<64x32xf32>
    %46 = tpu.matmul %1, %45, %cst_34 {dimension_numbers = #tpu.dot_dimension_numbers<[1], [0], [0], [1], [0, 0, 1, 1], [], []>} : vector<64x32xf32>, vector<32x32xf32>, vector<64x32xf32> -> vector<64x32xf32>
    %c0_35 = arith.constant 0 : index
    %c0_36 = arith.constant 0 : index
    %47 = vector.load %arg8[%c0_35, %c0_36] : memref<1x32xf32, #tpu.memory_space<vmem>>, vector<1x32xf32>
    %48 = vector.broadcast %47 : vector<1x32xf32> to vector<64x32xf32>
    %49 = arith.addf %46, %48 : vector<64x32xf32>
    %50 = vector.extract_strided_slice %49 {offsets = [0, 0], sizes = [64, 8], strides = [1, 1]} : vector<64x32xf32> to vector<64x8xf32>
    %c0_37 = arith.constant 0 : index
    %c0_38 = arith.constant 0 : index
    %c0_39 = arith.constant 0 : index
    %51 = vector.load %arg11[%c0_37, %c0_38, %c0_39] : memref<4x64x8xf32, #tpu.memory_space<vmem>>, vector<1x64x8xf32>
    %52 = vector.shape_cast %51 : vector<1x64x8xf32> to vector<64x8xf32>
    %53 = vector.shape_cast %50 : vector<64x8xf32> to vector<1x64x8xf32>
    tpu.vector_store %arg11[%c0_37, %c0_38, %c0_39], %53 {strides = array<i32>} : memref<4x64x8xf32, #tpu.memory_space<vmem>>, vector<1x64x8xf32>,
    %54 = vector.extract_strided_slice %49 {offsets = [0, 8], sizes = [64, 8], strides = [1, 1]} : vector<64x32xf32> to vector<64x8xf32>
    %c1_40 = arith.constant 1 : index
    %c0_41 = arith.constant 0 : index
    %c0_42 = arith.constant 0 : index
    %55 = vector.load %arg11[%c1_40, %c0_41, %c0_42] : memref<4x64x8xf32, #tpu.memory_space<vmem>>, vector<1x64x8xf32>
    %56 = vector.shape_cast %55 : vector<1x64x8xf32> to vector<64x8xf32>
    %57 = vector.shape_cast %54 : vector<64x8xf32> to vector<1x64x8xf32>
    tpu.vector_store %arg11[%c1_40, %c0_41, %c0_42], %57 {strides = array<i32>} : memref<4x64x8xf32, #tpu.memory_space<vmem>>, vector<1x64x8xf32>,
    %58 = vector.extract_strided_slice %49 {offsets = [0, 16], sizes = [64, 8], strides = [1, 1]} : vector<64x32xf32> to vector<64x8xf32>
    %c2_43 = arith.constant 2 : index
    %c0_44 = arith.constant 0 : index
    %c0_45 = arith.constant 0 : index
    %59 = vector.load %arg11[%c2_43, %c0_44, %c0_45] : memref<4x64x8xf32, #tpu.memory_space<vmem>>, vector<1x64x8xf32>
    %60 = vector.shape_cast %59 : vector<1x64x8xf32> to vector<64x8xf32>
    %61 = vector.shape_cast %58 : vector<64x8xf32> to vector<1x64x8xf32>
    tpu.vector_store %arg11[%c2_43, %c0_44, %c0_45], %61 {strides = array<i32>} : memref<4x64x8xf32, #tpu.memory_space<vmem>>, vector<1x64x8xf32>,
    %62 = vector.extract_strided_slice %49 {offsets = [0, 24], sizes = [64, 8], strides = [1, 1]} : vector<64x32xf32> to vector<64x8xf32>
    %c3_46 = arith.constant 3 : index
    %c0_47 = arith.constant 0 : index
    %c0_48 = arith.constant 0 : index
    %63 = vector.load %arg11[%c3_46, %c0_47, %c0_48] : memref<4x64x8xf32, #tpu.memory_space<vmem>>, vector<1x64x8xf32>
    %64 = vector.shape_cast %63 : vector<1x64x8xf32> to vector<64x8xf32>
    %65 = vector.shape_cast %62 : vector<64x8xf32> to vector<1x64x8xf32>
    tpu.vector_store %arg11[%c3_46, %c0_47, %c0_48], %65 {strides = array<i32>} : memref<4x64x8xf32, #tpu.memory_space<vmem>>, vector<1x64x8xf32>,
    return
  }
  func.func @transform_0(%arg0: i32, %arg1: i32) -> (i32, i32, i32) {
    %c0_i32 = arith.constant 0 : i32
    %c0_i32_0 = arith.constant 0 : i32
    return %arg0, %arg1, %c0_i32 : i32, i32, i32
  }
  func.func @transform_1(%arg0: i32, %arg1: i32) -> (i32, i32) {
    %c0_i32 = arith.constant 0 : i32
    %c0_i32_0 = arith.constant 0 : i32
    %c0_i32_1 = arith.constant 0 : i32
    return %c0_i32, %c0_i32_0 : i32, i32
  }
  func.func @transform_2(%arg0: i32, %arg1: i32) -> (i32, i32) {
    %c0_i32 = arith.constant 0 : i32
    %c0_i32_0 = arith.constant 0 : i32
    %c0_i32_1 = arith.constant 0 : i32
    return %c0_i32, %c0_i32_0 : i32, i32
  }
  func.func @transform_3(%arg0: i32, %arg1: i32) -> (i32, i32) {
    %c0_i32 = arith.constant 0 : i32
    %c0_i32_0 = arith.constant 0 : i32
    %c0_i32_1 = arith.constant 0 : i32
    return %c0_i32, %c0_i32_0 : i32, i32
  }
  func.func @transform_4(%arg0: i32, %arg1: i32) -> (i32, i32) {
    %c0_i32 = arith.constant 0 : i32
    %c0_i32_0 = arith.constant 0 : i32
    %c0_i32_1 = arith.constant 0 : i32
    return %c0_i32, %c0_i32_0 : i32, i32
  }
  func.func @transform_5(%arg0: i32, %arg1: i32) -> (i32, i32) {
    %c0_i32 = arith.constant 0 : i32
    %c0_i32_0 = arith.constant 0 : i32
    %c0_i32_1 = arith.constant 0 : i32
    return %c0_i32, %c0_i32_0 : i32, i32
  }
  func.func @transform_6(%arg0: i32, %arg1: i32) -> (i32, i32) {
    %c0_i32 = arith.constant 0 : i32
    %c0_i32_0 = arith.constant 0 : i32
    %c0_i32_1 = arith.constant 0 : i32
    return %c0_i32, %c0_i32_0 : i32, i32
  }
  func.func @transform_7(%arg0: i32, %arg1: i32) -> (i32, i32, i32) {
    %c0_i32 = arith.constant 0 : i32
    %c0_i32_0 = arith.constant 0 : i32
    return %arg0, %arg1, %c0_i32 : i32, i32, i32
  }
  func.func @transform_8(%arg0: i32, %arg1: i32) -> (i32, i32, i32) {
    %c0_i32 = arith.constant 0 : i32
    %c0_i32_0 = arith.constant 0 : i32
    return %arg0, %c0_i32, %arg1 : i32, i32, i32
  }
  func.func @transform_9(%arg0: i32, %arg1: i32) -> (i32, i32, i32) {
    %c0_i32 = arith.constant 0 : i32
    %c0_i32_0 = arith.constant 0 : i32
    return %arg0, %arg1, %c0_i32 : i32, i32, i32
  }
}

module attributes {stable_mosaic.version = 11 : i64} {
  func.func @_qkv_split_kernel(%arg0: i32, %arg1: i32, %arg2: memref<1x64x32xf32, #tpu.memory_space<vmem>>, %arg3: memref<32x32xf32, #tpu.memory_space<vmem>>, %arg4: memref<32x32xf32, #tpu.memory_space<vmem>>, %arg5: memref<32x32xf32, #tpu.memory_space<vmem>>, %arg6: memref<1x32xf32, #tpu.memory_space<vmem>>, %arg7: memref<1x32xf32, #tpu.memory_space<vmem>>, %arg8: memref<1x32xf32, #tpu.memory_space<vmem>>, %arg9: memref<4x64x8xf32, #tpu.memory_space<vmem>>, %arg10: memref<4x8x64xf32, #tpu.memory_space<vmem>>, %arg11: memref<4x64x8xf32, #tpu.memory_space<vmem>>) attributes {dimension_semantics = [#tpu.dimension_semantics<parallel>, #tpu.dimension_semantics<parallel>], iteration_bounds = array<i64: 2, 1>, scalar_prefetch = 0 : i64, scratch_operands = 0 : i64, tpu.core_type = #tpu.core_type<tc>, window_params = [{transform_indices = @transform_0, window_bounds = array<i64: 1, 64, 32>}, {pipeline_mode = #tpu.pipeline_mode<synchronous>, transform_indices = @transform_1, window_bounds = array<i64: 32, 32>}, {pipeline_mode = #tpu.pipeline_mode<synchronous>, transform_indices = @transform_2, window_bounds = array<i64: 32, 32>}, {pipeline_mode = #tpu.pipeline_mode<synchronous>, transform_indices = @transform_3, window_bounds = array<i64: 32, 32>}, {pipeline_mode = #tpu.pipeline_mode<synchronous>, transform_indices = @transform_4, window_bounds = array<i64: 1, 32>}, {pipeline_mode = #tpu.pipeline_mode<synchronous>, transform_indices = @transform_5, window_bounds = array<i64: 1, 32>}, {pipeline_mode = #tpu.pipeline_mode<synchronous>, transform_indices = @transform_6, window_bounds = array<i64: 1, 32>}, {transform_indices = @transform_7, window_bounds = array<i64: 4, 64, 8>}, {transform_indices = @transform_8, window_bounds = array<i64: 4, 8, 64>}, {transform_indices = @transform_9, window_bounds = array<i64: 4, 64, 8>}]} {
    %c0 = arith.constant 0 : index
    %c0_0 = arith.constant 0 : index
    %c0_1 = arith.constant 0 : index
    %0 = vector.load %arg2[%c0, %c0_0, %c0_1] : memref<1x64x32xf32, #tpu.memory_space<vmem>>, vector<1x64x32xf32>
    %1 = vector.shape_cast %0 : vector<1x64x32xf32> to vector<64x32xf32>
    %c0_2 = arith.constant 0 : index
    %c0_3 = arith.constant 0 : index
    %2 = vector.load %arg3[%c0_2, %c0_3] : memref<32x32xf32, #tpu.memory_space<vmem>>, vector<32x32xf32>
    %cst = arith.constant dense<0.000000e+00> : vector<64x32xf32>
    %3 = tpu.matmul %1, %2, %cst {dimension_numbers = #tpu.dot_dimension_numbers<[1], [0], [0], [1], [0, 0, 1, 1], [], []>} : vector<64x32xf32>, vector<32x32xf32>, vector<64x32xf32> -> vector<64x32xf32>
    %c0_4 = arith.constant 0 : index
    %c0_5 = arith.constant 0 : index
    %4 = vector.load %arg6[%c0_4, %c0_5] : memref<1x32xf32, #tpu.memory_space<vmem>>, vector<1x32xf32>
    %5 = vector.broadcast %4 : vector<1x32xf32> to vector<64x32xf32>
    %6 = arith.addf %3, %5 : vector<64x32xf32>
    %7 = vector.extract_strided_slice %6 {offsets = [0, 0], sizes = [64, 8], strides = [1, 1]} : vector<64x32xf32> to vector<64x8xf32>
    %c0_6 = arith.constant 0 : index
    %c0_7 = arith.constant 0 : index
    %c0_8 = arith.constant 0 : index
    %8 = vector.load %arg9[%c0_6, %c0_7, %c0_8] : memref<4x64x8xf32, #tpu.memory_space<vmem>>, vector<1x64x8xf32>
    %9 = vector.shape_cast %8 : vector<1x64x8xf32> to vector<64x8xf32>
    %10 = vector.shape_cast %7 : vector<64x8xf32> to vector<1x64x8xf32>
    tpu.vector_store %arg9[%c0_6, %c0_7, %c0_8], %10 {strides = array<i32>} : memref<4x64x8xf32, #tpu.memory_space<vmem>>, vector<1x64x8xf32>,
    %11 = vector.extract_strided_slice %6 {offsets = [0, 8], sizes = [64, 8], strides = [1, 1]} : vector<64x32xf32> to vector<64x8xf32>
    %c1 = arith.constant 1 : index
    %c0_9 = arith.constant 0 : index
    %c0_10 = arith.constant 0 : index
    %12 = vector.load %arg9[%c1, %c0_9, %c0_10] : memref<4x64x8xf32, #tpu.memory_space<vmem>>, vector<1x64x8xf32>
    %13 = vector.shape_cast %12 : vector<1x64x8xf32> to vector<64x8xf32>
    %14 = vector.shape_cast %11 : vector<64x8xf32> to vector<1x64x8xf32>
    tpu.vector_store %arg9[%c1, %c0_9, %c0_10], %14 {strides = array<i32>} : memref<4x64x8xf32, #tpu.memory_space<vmem>>, vector<1x64x8xf32>,
    %15 = vector.extract_strided_slice %6 {offsets = [0, 16], sizes = [64, 8], strides = [1, 1]} : vector<64x32xf32> to vector<64x8xf32>
    %c2 = arith.constant 2 : index
    %c0_11 = arith.constant 0 : index
    %c0_12 = arith.constant 0 : index
    %16 = vector.load %arg9[%c2, %c0_11, %c0_12] : memref<4x64x8xf32, #tpu.memory_space<vmem>>, vector<1x64x8xf32>
    %17 = vector.shape_cast %16 : vector<1x64x8xf32> to vector<64x8xf32>
    %18 = vector.shape_cast %15 : vector<64x8xf32> to vector<1x64x8xf32>
    tpu.vector_store %arg9[%c2, %c0_11, %c0_12], %18 {strides = array<i32>} : memref<4x64x8xf32, #tpu.memory_space<vmem>>, vector<1x64x8xf32>,
    %19 = vector.extract_strided_slice %6 {offsets = [0, 24], sizes = [64, 8], strides = [1, 1]} : vector<64x32xf32> to vector<64x8xf32>
    %c3 = arith.constant 3 : index
    %c0_13 = arith.constant 0 : index
    %c0_14 = arith.constant 0 : index
    %20 = vector.load %arg9[%c3, %c0_13, %c0_14] : memref<4x64x8xf32, #tpu.memory_space<vmem>>, vector<1x64x8xf32>
    %21 = vector.shape_cast %20 : vector<1x64x8xf32> to vector<64x8xf32>
    %22 = vector.shape_cast %19 : vector<64x8xf32> to vector<1x64x8xf32>
    tpu.vector_store %arg9[%c3, %c0_13, %c0_14], %22 {strides = array<i32>} : memref<4x64x8xf32, #tpu.memory_space<vmem>>, vector<1x64x8xf32>,
    %c0_15 = arith.constant 0 : index
    %c0_16 = arith.constant 0 : index
    %23 = vector.load %arg4[%c0_15, %c0_16] : memref<32x32xf32, #tpu.memory_space<vmem>>, vector<32x32xf32>
    %cst_17 = arith.constant dense<0.000000e+00> : vector<64x32xf32>
    %24 = tpu.matmul %1, %23, %cst_17 {dimension_numbers = #tpu.dot_dimension_numbers<[1], [0], [0], [1], [0, 0, 1, 1], [], []>} : vector<64x32xf32>, vector<32x32xf32>, vector<64x32xf32> -> vector<64x32xf32>
    %c0_18 = arith.constant 0 : index
    %c0_19 = arith.constant 0 : index
    %25 = vector.load %arg7[%c0_18, %c0_19] : memref<1x32xf32, #tpu.memory_space<vmem>>, vector<1x32xf32>
    %26 = vector.broadcast %25 : vector<1x32xf32> to vector<64x32xf32>
    %27 = arith.addf %24, %26 : vector<64x32xf32>
    %28 = tpu.transpose %27, [1, 0] : vector<64x32xf32> -> vector<32x64xf32>
    %29 = vector.extract_strided_slice %28 {offsets = [0, 0], sizes = [8, 64], strides = [1, 1]} : vector<32x64xf32> to vector<8x64xf32>
    %c0_20 = arith.constant 0 : index
    %c0_21 = arith.constant 0 : index
    %c0_22 = arith.constant 0 : index
    %30 = vector.load %arg10[%c0_20, %c0_21, %c0_22] : memref<4x8x64xf32, #tpu.memory_space<vmem>>, vector<1x8x64xf32>
    %31 = vector.shape_cast %30 : vector<1x8x64xf32> to vector<8x64xf32>
    %32 = vector.shape_cast %29 : vector<8x64xf32> to vector<1x8x64xf32>
    tpu.vector_store %arg10[%c0_20, %c0_21, %c0_22], %32 {strides = array<i32>} : memref<4x8x64xf32, #tpu.memory_space<vmem>>, vector<1x8x64xf32>,
    %33 = vector.extract_strided_slice %28 {offsets = [8, 0], sizes = [8, 64], strides = [1, 1]} : vector<32x64xf32> to vector<8x64xf32>
    %c1_23 = arith.constant 1 : index
    %c0_24 = arith.constant 0 : index
    %c0_25 = arith.constant 0 : index
    %34 = vector.load %arg10[%c1_23, %c0_24, %c0_25] : memref<4x8x64xf32, #tpu.memory_space<vmem>>, vector<1x8x64xf32>
    %35 = vector.shape_cast %34 : vector<1x8x64xf32> to vector<8x64xf32>
    %36 = vector.shape_cast %33 : vector<8x64xf32> to vector<1x8x64xf32>
    tpu.vector_store %arg10[%c1_23, %c0_24, %c0_25], %36 {strides = array<i32>} : memref<4x8x64xf32, #tpu.memory_space<vmem>>, vector<1x8x64xf32>,
    %37 = vector.extract_strided_slice %28 {offsets = [16, 0], sizes = [8, 64], strides = [1, 1]} : vector<32x64xf32> to vector<8x64xf32>
    %c2_26 = arith.constant 2 : index
    %c0_27 = arith.constant 0 : index
    %c0_28 = arith.constant 0 : index
    %38 = vector.load %arg10[%c2_26, %c0_27, %c0_28] : memref<4x8x64xf32, #tpu.memory_space<vmem>>, vector<1x8x64xf32>
    %39 = vector.shape_cast %38 : vector<1x8x64xf32> to vector<8x64xf32>
    %40 = vector.shape_cast %37 : vector<8x64xf32> to vector<1x8x64xf32>
    tpu.vector_store %arg10[%c2_26, %c0_27, %c0_28], %40 {strides = array<i32>} : memref<4x8x64xf32, #tpu.memory_space<vmem>>, vector<1x8x64xf32>,
    %41 = vector.extract_strided_slice %28 {offsets = [24, 0], sizes = [8, 64], strides = [1, 1]} : vector<32x64xf32> to vector<8x64xf32>
    %c3_29 = arith.constant 3 : index
    %c0_30 = arith.constant 0 : index
    %c0_31 = arith.constant 0 : index
    %42 = vector.load %arg10[%c3_29, %c0_30, %c0_31] : memref<4x8x64xf32, #tpu.memory_space<vmem>>, vector<1x8x64xf32>
    %43 = vector.shape_cast %42 : vector<1x8x64xf32> to vector<8x64xf32>
    %44 = vector.shape_cast %41 : vector<8x64xf32> to vector<1x8x64xf32>
    tpu.vector_store %arg10[%c3_29, %c0_30, %c0_31], %44 {strides = array<i32>} : memref<4x8x64xf32, #tpu.memory_space<vmem>>, vector<1x8x64xf32>,
    %c0_32 = arith.constant 0 : index
    %c0_33 = arith.constant 0 : index
    %45 = vector.load %arg5[%c0_32, %c0_33] : memref<32x32xf32, #tpu.memory_space<vmem>>, vector<32x32xf32>
    %cst_34 = arith.constant dense<0.000000e+00> : vector<64x32xf32>
    %46 = tpu.matmul %1, %45, %cst_34 {dimension_numbers = #tpu.dot_dimension_numbers<[1], [0], [0], [1], [0, 0, 1, 1], [], []>} : vector<64x32xf32>, vector<32x32xf32>, vector<64x32xf32> -> vector<64x32xf32>
    %c0_35 = arith.constant 0 : index
    %c0_36 = arith.constant 0 : index
    %47 = vector.load %arg8[%c0_35, %c0_36] : memref<1x32xf32, #tpu.memory_space<vmem>>, vector<1x32xf32>
    %48 = vector.broadcast %47 : vector<1x32xf32> to vector<64x32xf32>
    %49 = arith.addf %46, %48 : vector<64x32xf32>
    %50 = vector.extract_strided_slice %49 {offsets = [0, 0], sizes = [64, 8], strides = [1, 1]} : vector<64x32xf32> to vector<64x8xf32>
    %c0_37 = arith.constant 0 : index
    %c0_38 = arith.constant 0 : index
    %c0_39 = arith.constant 0 : index
    %51 = vector.load %arg11[%c0_37, %c0_38, %c0_39] : memref<4x64x8xf32, #tpu.memory_space<vmem>>, vector<1x64x8xf32>
    %52 = vector.shape_cast %51 : vector<1x64x8xf32> to vector<64x8xf32>
    %53 = vector.shape_cast %50 : vector<64x8xf32> to vector<1x64x8xf32>
    tpu.vector_store %arg11[%c0_37, %c0_38, %c0_39], %53 {strides = array<i32>} : memref<4x64x8xf32, #tpu.memory_space<vmem>>, vector<1x64x8xf32>,
    %54 = vector.extract_strided_slice %49 {offsets = [0, 8], sizes = [64, 8], strides = [1, 1]} : vector<64x32xf32> to vector<64x8xf32>
    %c1_40 = arith.constant 1 : index
    %c0_41 = arith.constant 0 : index
    %c0_42 = arith.constant 0 : index
    %55 = vector.load %arg11[%c1_40, %c0_41, %c0_42] : memref<4x64x8xf32, #tpu.memory_space<vmem>>, vector<1x64x8xf32>
    %56 = vector.shape_cast %55 : vector<1x64x8xf32> to vector<64x8xf32>
    %57 = vector.shape_cast %54 : vector<64x8xf32> to vector<1x64x8xf32>
    tpu.vector_store %arg11[%c1_40, %c0_41, %c0_42], %57 {strides = array<i32>} : memref<4x64x8xf32, #tpu.memory_space<vmem>>, vector<1x64x8xf32>,
    %58 = vector.extract_strided_slice %49 {offsets = [0, 16], sizes = [64, 8], strides = [1, 1]} : vector<64x32xf32> to vector<64x8xf32>
    %c2_43 = arith.constant 2 : index
    %c0_44 = arith.constant 0 : index
    %c0_45 = arith.constant 0 : index
    %59 = vector.load %arg11[%c2_43, %c0_44, %c0_45] : memref<4x64x8xf32, #tpu.memory_space<vmem>>, vector<1x64x8xf32>
    %60 = vector.shape_cast %59 : vector<1x64x8xf32> to vector<64x8xf32>
    %61 = vector.shape_cast %58 : vector<64x8xf32> to vector<1x64x8xf32>
    tpu.vector_store %arg11[%c2_43, %c0_44, %c0_45], %61 {strides = array<i32>} : memref<4x64x8xf32, #tpu.memory_space<vmem>>, vector<1x64x8xf32>,
    %62 = vector.extract_strided_slice %49 {offsets = [0, 24], sizes = [64, 8], strides = [1, 1]} : vector<64x32xf32> to vector<64x8xf32>
    %c3_46 = arith.constant 3 : index
    %c0_47 = arith.constant 0 : index
    %c0_48 = arith.constant 0 : index
    %63 = vector.load %arg11[%c3_46, %c0_47, %c0_48] : memref<4x64x8xf32, #tpu.memory_space<vmem>>, vector<1x64x8xf32>
    %64 = vector.shape_cast %63 : vector<1x64x8xf32> to vector<64x8xf32>
    %65 = vector.shape_cast %62 : vector<64x8xf32> to vector<1x64x8xf32>
    tpu.vector_store %arg11[%c3_46, %c0_47, %c0_48], %65 {strides = array<i32>} : memref<4x64x8xf32, #tpu.memory_space<vmem>>, vector<1x64x8xf32>,
    return
  }
  func.func @transform_0(%arg0: i32, %arg1: i32) -> (i32, i32, i32) {
    %c0_i32 = arith.constant 0 : i32
    %c0_i32_0 = arith.constant 0 : i32
    return %arg0, %arg1, %c0_i32 : i32, i32, i32
  }
  func.func @transform_1(%arg0: i32, %arg1: i32) -> (i32, i32) {
    %c0_i32 = arith.constant 0 : i32
    %c0_i32_0 = arith.constant 0 : i32
    %c0_i32_1 = arith.constant 0 : i32
    return %c0_i32, %c0_i32_0 : i32, i32
  }
  func.func @transform_2(%arg0: i32, %arg1: i32) -> (i32, i32) {
    %c0_i32 = arith.constant 0 : i32
    %c0_i32_0 = arith.constant 0 : i32
    %c0_i32_1 = arith.constant 0 : i32
    return %c0_i32, %c0_i32_0 : i32, i32
  }
  func.func @transform_3(%arg0: i32, %arg1: i32) -> (i32, i32) {
    %c0_i32 = arith.constant 0 : i32
    %c0_i32_0 = arith.constant 0 : i32
    %c0_i32_1 = arith.constant 0 : i32
    return %c0_i32, %c0_i32_0 : i32, i32
  }
  func.func @transform_4(%arg0: i32, %arg1: i32) -> (i32, i32) {
    %c0_i32 = arith.constant 0 : i32
    %c0_i32_0 = arith.constant 0 : i32
    %c0_i32_1 = arith.constant 0 : i32
    return %c0_i32, %c0_i32_0 : i32, i32
  }
  func.func @transform_5(%arg0: i32, %arg1: i32) -> (i32, i32) {
    %c0_i32 = arith.constant 0 : i32
    %c0_i32_0 = arith.constant 0 : i32
    %c0_i32_1 = arith.constant 0 : i32
    return %c0_i32, %c0_i32_0 : i32, i32
  }
  func.func @transform_6(%arg0: i32, %arg1: i32) -> (i32, i32) {
    %c0_i32 = arith.constant 0 : i32
    %c0_i32_0 = arith.constant 0 : i32
    %c0_i32_1 = arith.constant 0 : i32
    return %c0_i32, %c0_i32_0 : i32, i32
  }
  func.func @transform_7(%arg0: i32, %arg1: i32) -> (i32, i32, i32) {
    %c0_i32 = arith.constant 0 : i32
    %c0_i32_0 = arith.constant 0 : i32
    return %arg0, %arg1, %c0_i32 : i32, i32, i32
  }
  func.func @transform_8(%arg0: i32, %arg1: i32) -> (i32, i32, i32) {
    %c0_i32 = arith.constant 0 : i32
    %c0_i32_0 = arith.constant 0 : i32
    return %arg0, %c0_i32, %arg1 : i32, i32, i32
  }
  func.func @transform_9(%arg0: i32, %arg1: i32) -> (i32, i32, i32) {
    %c0_i32 = arith.constant 0 : i32
    %c0_i32_0 = arith.constant 0 : i32
    return %arg0, %arg1, %c0_i32 : i32, i32, i32
  }
}

</mosaic_0001>

<bundles_post_ra>
// kernel: tpu_custom_call.1
= control target key start
LH: loop header
LB: loop body
LE: loop exit
PB: predicated region body
PF: predicated region fallthrough
CT: control target
= control target key end

     0   :  { %15 = vsyncpa [#allocation3], 0  ;;  %s2127_s0 = inlined_call_operand.vmem [shape: f32[2,64,32], index: 0, kind: input, shape index: {}]   ;;  %s2128_s1 = inlined_call_operand.vmem [shape: f32[32,32], index: 1, kind: input, shape index: {}]   ;;  %s2129_s2 = inlined_call_operand.vmem [shape: f32[32,32], index: 2, kind: input, shape index: {}]   ;;  %s2130_s3 = inlined_call_operand.vmem [shape: f32[32,32], index: 3, kind: input, shape index: {}]   ;;  %s2131_s4 = inlined_call_operand.vmem [shape: f32[1,32], index: 4, kind: input, shape index: {}]   ;;  %s2132_s5 = inlined_call_operand.vmem [shape: f32[1,32], index: 5, kind: input, shape index: {}]   ;;  %s2133_s6 = inlined_call_operand.vmem [shape: f32[1,32], index: 6, kind: input, shape index: {}]   ;;  %s2134_s7 = inlined_call_operand.vmem [shape: f32[8,64,8], index: 7, kind: output, shape index: {0}]   ;;  %s2135_s8 = inlined_call_operand.hbm [shape: f32[8,8,64], index: 8, kind: output, shape index: {1}]   ;;  %s2136_s9 = inlined_call_operand.vmem [shape: f32[8,64,8], index: 9, kind: output, shape index: {2}]  }
   0x1   :  { %17 = vsyncpa [#allocation3 + $0x1], 0  ;;  %s1688_s30 = smov 0   ;;  %s1690_s10 = smov 0  }
   0x2   :  { %s1692_s11 = smov 0   ;;  %s1694_s12 = smov 0  }
   0x3   :  { %s1696_s13 = smov 0   ;;  %s1698_s14 = smov 0  }
   0x4 LB: > { %s1266_s15 = sadd.s32 4294967295, %s1630_s14   ;;  %s1267_s16 = sadd.s32 4294967294, %s1630_s14   ;;  %s1630_s14 = sphi %s1698_s14, %s23_s14   ;;  %s1626_s13 = sphi %s1696_s13, %s2143_s13   ;;  %s1622_s12 = sphi %s1694_s12, %s2142_s12   ;;  %s1618_s11 = sphi %s1692_s11, %s2141_s11   ;;  %s1614_s10 = sphi %s1690_s10, %s2140_s10   ;;  %s1610_s30 = sphi %s1688_s30, %s2139_s30  }
   0x5   : > { %s35_s17 = sadd.s32 1, %s1626_s13  ;;  %s226_s18 = sadd.s32 1, %s1618_s11 }
   0x6   : > { %p37_p0 = scmp.ge.s32.totalorder %s35_s17, 2  ;;  %p236_p1 = scmp.ne.s32.totalorder %s1618_s11, %s1614_s10 }
   0x7   : > { %p237_p2 = scmp.eq.s32.totalorder %s1266_s15, 1  ;;  %p242_p3 = scmp.ne.s32.totalorder %s1614_s10, %s1610_s30 }
   0x8   : > { %s2145_s17 = smov (%p37_p0, %s35_s17), 0  ;;  %p243_p5 = scmp.eq.s32.totalorder %s1267_s16, 1 }
   0x9   : > { %p1728_p4 = por %p237_p2, %p236_p1  ;;  %s221_s20 = ssub.s32 %s1626_s13, %s2145_s17 }
   0xa   : > { %p1270_p6 = scmp.ge.s32.totalorder %s1630_s14, 1  ;;  %p224_p7 = scmp.eq.s32.totalorder %s221_s20, 0 }
   0xb   : > { %p1735_p8 = por %p243_p5, %p242_p3  ;;  %p320_p9 = scmp.lt.s32.totalorder %s1630_s14, 3 }
   0xc   : > { %s1741_s22 = scalar_select %p224_p7, %s1618_s11, %s226_s18  }
   0xd   : > { %p321_p10 = pnand %p1270_p6, %p320_p9 }
   0xe   : > { %v423_v0 = vld [vmem:[%s2128_s1] sm:$0xff] (!%p321_p10)  ;;  %v424_v1 = vld [vmem:[%s2128_s1 + $0x8] sm:$0xff] (!%p321_p10)  ;;  %v425_v2 = vld [vmem:[%s2128_s1 + $0x10] sm:$0xff] (!%p321_p10)  ;;  %p381_p11 = scmp.lt.s32.totalorder (!%p321_p10), %s1622_s12, 1  ;;  %vm434_vm0 = vcmask (!%p321_p10), 261120   ;;  %s1274_s15 = sshll.u32 (!%p321_p10), %s1622_s12, 2 }
   0xf   : > { %324 = sbr.rel (%p321_p10) target bundleno = 505 (0x1f9), region = 48  ;;  %v1463_v3 = vpack.c.bf16 (!%p321_p10), %v424_v1, %v423_v0  ;;  %v426_v4 = vld [vmem:[%s2128_s1 + $0x18] sm:$0xff] (!%p321_p10)  ;;  %v836_v6 = vld [vmem:[%s2130_s3] sm:$0xff] (!%p321_p10)  ;;  %v837_v7 = vld [vmem:[%s2130_s3 + $0x8] sm:$0xff] (!%p321_p10)  ;;  %p392_p12 = scmp.lt.s32.totalorder (!%p321_p10), %s1274_s15, 7  ;;  %vm564_vm1 = vcmask (!%p321_p10), 64512  }
  0x10   : > { %v1467_v5 = vpack.c.bf16 (!%p321_p10), %v426_v4, %v425_v2  ;;  %v680_v8 = vld [vmem:[%s2129_s2] sm:$0xff] (!%p321_p10)  ;;  %v681_v9 = vld [vmem:[%s2129_s2 + $0x8] sm:$0xff] (!%p321_p10)  ;;  %v1479_v10 = vpack.c.bf16 (!%p321_p10), %v837_v7, %v836_v6  ;;  %v838_v14 = vld [vmem:[%s2130_s3 + $0x10] sm:$0xff] (!%p321_p10)  ;;  %s1632_s26 = smov (!%p321_p10), 120   ;;  %s1633_s27 = smov (!%p321_p10), 112   ;;  %vm828_vm2 = vcmask (!%p321_p10), 523264  }
  0x11   : > { %1464 = vmatprep.subr.bf16.mxu0 (!%p321_p10), %v1463_v3  ;;  %1487 = vmatprep.subr.bf16.mxu1 (!%p321_p10), %v1463_v3  ;;  %v1471_v11 = vpack.c.bf16 (!%p321_p10), %v681_v9, %v680_v8  ;;  %v839_v15 = vld [vmem:[%s2130_s3 + $0x18] sm:$0xff] (!%p321_p10)  ;;  %v682_v16 = vld [vmem:[%s2129_s2 + $0x10] sm:$0xff] (!%p321_p10)  ;;  %v1280_v26 = vld [vmem:[%s2131_s4] ss:$0 sm:$0xff] (!%p321_p10) }
  0x12   : > { %1466 = vmatpush3.bf16.msra.mxu0 (!%p321_p10), %v1463_v3  ;;  %1489 = vmatpush3.bf16.msra.mxu1 (!%p321_p10), %v1463_v3  ;;  %v683_v17 = vld [vmem:[%s2129_s2 + $0x18] sm:$0xff] (!%p321_p10)  ;;  %v1483_v22 = vpack.c.bf16 (!%p321_p10), %v839_v15, %v838_v14  ;;  %v1325_v43 = vld [vmem:[%s2133_s6] ss:$0 sm:$0xff] (!%p321_p10) }
  0x13   : > { %1468 = vmatprep.subr.bf16.mxu0 (!%p321_p10), %v1467_v5  ;;  %1488 = vmatprep.subr.bf16.mxu1 (!%p321_p10), %v1467_v5  ;;  %v1475_v23 = vpack.c.bf16 (!%p321_p10), %v683_v17, %v682_v16  ;;  %v1313_v4 = vld [vmem:[%s2132_s5] ss:$0 sm:$0xff] (!%p321_p10) }
  0x16   : > { %s382_s16 = scalar_select %p381_p11, %s1622_s12, 1  ;;  %1470 = vmatpush3.bf16.msra.mxu0 %v1467_v5  ;;  %1490 = vmatpush3.bf16.msra.mxu1 %v1467_v5 }
  0x17   : > { %1480 = vmatprep.subr.bf16.mxu0 %v1479_v10  ;;  %1472 = vmatprep.subr.bf16.mxu1 %v1471_v11  ;;  %s2147_s15 = smov (!%p392_p12, %s1274_s15), 7 }
  0x18   : > { %s1363_s29 = sshll.u32 %s382_s16, 6  ;;  %s1364_s18 = sshll.u32 %s2147_s15, 6 }
  0x19   : > { %s388_s20 = scalar_lea.vmem %s2127_s0, %s1363_s29  ;;  %s1820_s25 = scalar_lea.vmem %s2134_s7, %s1364_s18 }
  0x1a   : > { %v415_v12 = vld [vmem:[%s388_s20] sm:$0xff]  ;;  %v416_v18 = vld [vmem:[%s388_s20 + $0x8] sm:$0xff]  ;;  %v417_v20 = vld [vmem:[%s388_s20 + $0x10] sm:$0xff]  ;;  %s1855_s24 = scalar_lea.vmem %s2136_s9, %s1364_s18  ;;  %s1634_s15 = smov 104  }
  0x1b   : > { %v419_v13 = vld [vmem:[%s388_s20 + $0x20] sm:$0xff]  ;;  %1411 = vmatprep.mubr.msk.f32.mxu0 %vm434_vm0, %v415_v12  ;;  %v420_v19 = vld [vmem:[%s388_s20 + $0x28] sm:$0xff]  ;;  %v421_v21 = vld [vmem:[%s388_s20 + $0x30] sm:$0xff]  ;;  %s1366_s29 = sshll.u32 %s1622_s12, 9  ;;  %s1635_s16 = smov [#allocation2]  }
  0x1c   : > { %1417 = vmatprep.mubr.msk.f32.mxu1 %vm434_vm0, %v419_v13  ;;  %1412 = vmatmul.mubr.msk.f32.vlgmr.msra.gmra.mrb[0].mxu0 %vm434_vm0, %v416_v18  ;;  %v418_v24 = vld [vmem:[%s388_s20 + $0x18] sm:$0xff] }
  0x1d   : > { %1418 = vmatmul.mubr.msk.f32.vlgmr.msra.gmra.mrb[0].mxu1 %vm434_vm0, %v420_v19  ;;  %1414 = vmatprep.mubr.msk.f32.mxu0 %vm434_vm0, %v417_v20  ;;  %v422_v25 = vld [vmem:[%s388_s20 + $0x38] sm:$0xff] }
  0x1e   : > { %1420 = vmatprep.mubr.msk.f32.mxu1 %vm434_vm0, %v421_v21  ;;  %1482 = vmatpush3.bf16.msra.mxu0 %v1479_v10 }
  0x1f   : > { %1474 = vmatpush3.bf16.msra.mxu1 %v1471_v11  ;;  %1484 = vmatprep.subr.bf16.mxu0 %v1483_v22 }
  0x20   : > { %1476 = vmatprep.subr.bf16.mxu1 %v1475_v23  ;;  %1415 = vmatmul.mubr.msk.f32.gmra.mrb[2].mxu0 %vm434_vm0, %v418_v24 }
  0x21   : > { %1421 = vmatmul.mubr.msk.f32.gmra.mrb[2].mxu1 %vm434_vm0, %v422_v25  ;;  %1451 = vmatprep.mubr.msk.f32.mxu0 %vm434_vm0, %v415_v12 }
  0x22   : > { %1431 = vmatprep.mubr.msk.f32.mxu1 %vm434_vm0, %v415_v12  ;;  %1486 = vmatpush3.bf16.msra.mxu0 %v1483_v22 }
  0x23   : > { %1478 = vmatpush3.bf16.msra.mxu1 %v1475_v23 }
  0x25   : > { %1452 = vmatmul.mubr.msk.f32.vlgmr.msra.gmra.mrb[4].mxu0 %vm434_vm0, %v416_v18 }
  0x26   : > { %1432 = vmatmul.mubr.msk.f32.vlgmr.msra.gmra.mrb[4].mxu1 %vm434_vm0, %v416_v18  ;;  %1454 = vmatprep.mubr.msk.f32.mxu0 %vm434_vm0, %v417_v20 }
  0x27   : > { %1434 = vmatprep.mubr.msk.f32.mxu1 %vm434_vm0, %v417_v20 }
  0x29   : > { %1455 = vmatmul.mubr.msk.f32.gmra.mrb[6].mxu0 %vm434_vm0, %v418_v24 }
  0x2a   : > { %1435 = vmatmul.mubr.msk.f32.gmra.mrb[6].mxu1 %vm434_vm0, %v418_v24  ;;  %1457 = vmatprep.mubr.msk.f32.mxu0 %vm434_vm0, %v419_v13 }
  0x2b   : > { %1437 = vmatprep.mubr.msk.f32.mxu1 %vm434_vm0, %v419_v13 }
  0x2d   : > { %1458 = vmatmul.mubr.msk.f32.gmra.mrb[8].mxu0 %vm434_vm0, %v420_v19 }
  0x2e   : > { %1438 = vmatmul.mubr.msk.f32.gmra.mrb[8].mxu1 %vm434_vm0, %v420_v19  ;;  %1460 = vmatprep.mubr.msk.f32.mxu0 %vm434_vm0, %v421_v21 }
  0x2f   : > { %1440 = vmatprep.mubr.msk.f32.mxu1 %vm434_vm0, %v421_v21 }
  0x31   : > { %1461 = vmatmul.mubr.msk.f32.gmra.mrb[10].mxu0 %vm434_vm0, %v422_v25 }
  0x32   : > { %1441 = vmatmul.mubr.msk.f32.gmra.mrb[10].mxu1 %vm434_vm0, %v422_v25 }
  0xef   : > { %v1413_v27 = vpop.f32.mrb[0].mxu0 }
  0xf0   : > { %v1419_v28 = vpop.f32.mrb[0].mxu1  ;;  %v531_v29 = vadd.f32 %v1413_v27, %v1280_v26  ;;  %v525_v31 = vpop.f32.mrb[1].mxu0 }
  0xf1   : > { %v551_v30 = vadd.f32 %v1419_v28, %v1280_v26  ;;  %v545_v32 = vpop.f32.mrb[1].mxu1  ;;  %v526_v33 = vadd.f32 %v1280_v26, %v525_v31 }
  0xf2   : > { %v1822_v34 = vadd.f32 %v1280_v26, %v545_v32  ;;  %583 = vrot.lane.b32.xlu0 %v531_v29, %s1632_s26  ;;  %566 = vst.msk [vmem:[%s1820_s25 + $0x8] sm:$0xff] %vm564_vm1, %v531_v29 }
  0xf3   : > { %591 = vrot.lane.b32.xlu1 %v551_v30, %s1632_s26  ;;  %570 = vst.msk [vmem:[%s1820_s25 + $0x28] sm:$0xff] %vm564_vm1, %v551_v30  ;;  %v1416_v35 = vpop.f32.mrb[2].mxu0  ;;  %565 = vst.msk [vmem:[%s1820_s25] sm:$0xff] %vm564_vm1, %v526_v33 }
  0xf4   : > { %v1422_v36 = vpop.f32.mrb[2].mxu1  ;;  %569 = vst.msk [vmem:[%s1820_s25 + $0x20] sm:$0xff] %vm564_vm1, %v1822_v34  ;;  %v541_v37 = vadd.f32 %v1416_v35, %v1280_v26  ;;  %v535_v40 = vpop.f32.mrb[3].mxu0 }
  0xf5   : > { %v561_v38 = vadd.f32 %v1422_v36, %v1280_v26  ;;  %v555_v39 = vpop.f32.mrb[3].mxu1  ;;  %v536_v42 = vadd.f32 %v1280_v26, %v535_v40 }
  0xf6   : > { %v556_v41 = vadd.f32 %v1280_v26, %v555_v39  ;;  %581 = vrot.lane.b32.xlu0 %v526_v33, %s1632_s26  ;;  %568 = vst.msk [vmem:[%s1820_s25 + $0x18] sm:$0xff] %vm564_vm1, %v541_v37 }
  0xf7   : > { %616 = vrot.lane.b32.xlu1 %v531_v29, %s1633_s27  ;;  %572 = vst.msk [vmem:[%s1820_s25 + $0x38] sm:$0xff] %vm564_vm1, %v561_v38  ;;  %567 = vst.msk [vmem:[%s1820_s25 + $0x10] sm:$0xff] %vm564_vm1, %v536_v42 }
  0xf8   : > { %571 = vst.msk [vmem:[%s1820_s25 + $0x30] sm:$0xff] %vm564_vm1, %v556_v41  ;;  %v1453_v44 = vpop.f32.mrb[4].mxu0 }
  0xf9   : > { %v1848_v45 = vpop.f32.mrb[4].mxu1  ;;  %v1857_v46 = vadd.f32 %v1453_v44, %v1325_v43  ;;  %v913_v47 = vpop.f32.mrb[5].mxu0 }
  0xfa   : > { %v757_v48 = vpop.f32.mrb[5].mxu1  ;;  %589 = vrot.lane.b32.xlu0 %v1822_v34, %s1632_s26  ;;  %v1862_v49 = vadd.f32 %v1325_v43, %v913_v47  ;;  %v763_v6 = vadd.f32 %v1848_v45, %v1313_v4 }
  0xfb   : > { %624 = vrot.lane.b32.xlu1 %v551_v30, %s1633_s27  ;;  %953 = vst.msk [vmem:[%s1855_s24 + $0x8] sm:$0xff] %vm564_vm1, %v1857_v46  ;;  %v758_v5 = vadd.f32 %v1313_v4, %v757_v48 }
  0xfc   : > { %v1456_v50 = vpop.f32.mrb[6].mxu0  ;;  %952 = vst.msk [vmem:[%s1855_s24] sm:$0xff] %vm564_vm1, %v1862_v49 }
  0xfd   : > { %v1436_v51 = vpop.f32.mrb[6].mxu1  ;;  %v1870_v52 = vadd.f32 %v1456_v50, %v1325_v43  ;;  %v923_v53 = vpop.f32.mrb[7].mxu0 }
  0xfe   : > { %v767_v54 = vpop.f32.mrb[7].mxu1  ;;  %614 = vrot.lane.b32.xlu0 %v526_v33, %s1633_s27  ;;  %v1874_v55 = vadd.f32 %v1325_v43, %v923_v53  ;;  %v773_v8 = vadd.f32 %v1436_v51, %v1313_v4 }
  0xff   : > { %649 = vrot.lane.b32.xlu1 %v531_v29, %s1634_s15  ;;  %955 = vst.msk [vmem:[%s1855_s24 + $0x18] sm:$0xff] %vm564_vm1, %v1870_v52  ;;  %v768_v7 = vadd.f32 %v1313_v4, %v767_v54 }
 0x100   : > { %v1459_v56 = vpop.f32.mrb[8].mxu0  ;;  %954 = vst.msk [vmem:[%s1855_s24 + $0x10] sm:$0xff] %vm564_vm1, %v1874_v55 }
 0x101   : > { %v1439_v57 = vpop.f32.mrb[8].mxu1  ;;  %v1882_v58 = vadd.f32 %v1459_v56, %v1325_v43  ;;  %v933_v59 = vpop.f32.mrb[9].mxu0 }
 0x102   : > { %v777_v60 = vpop.f32.mrb[9].mxu1  ;;  %622 = vrot.lane.b32.xlu0 %v1822_v34, %s1633_s27  ;;  %v1887_v61 = vadd.f32 %v1325_v43, %v933_v59  ;;  %v783_v10 = vadd.f32 %v1439_v57, %v1313_v4 }
 0x103   : > { %657 = vrot.lane.b32.xlu1 %v551_v30, %s1634_s15  ;;  %957 = vst.msk [vmem:[%s1855_s24 + $0x28] sm:$0xff] %vm564_vm1, %v1882_v58  ;;  %v778_v9 = vadd.f32 %v1313_v4, %v777_v60 }
 0x104   : > { %v1462_v63 = vpop.f32.mrb[10].mxu0  ;;  %956 = vst.msk [vmem:[%s1855_s24 + $0x20] sm:$0xff] %vm564_vm1, %v1887_v61 }
 0x105   : > { %v1442_v62 = vpop.f32.mrb[10].mxu1  ;;  %v1895_v0 = vadd.f32 %v1462_v63, %v1325_v43  ;;  %v943_v2 = vpop.f32.mrb[11].mxu0 }
 0x106   : > { %v787_v1 = vpop.f32.mrb[11].mxu1  ;;  %647 = vrot.lane.b32.xlu0 %v526_v33, %s1634_s15  ;;  %v1899_v3 = vadd.f32 %v1325_v43, %v943_v2  ;;  %v793_v12 = vadd.f32 %v1442_v62, %v1313_v4 }
 0x107   : > { %587 = vrot.lane.b32.xlu1 %v541_v37, %s1632_s26  ;;  %959 = vst.msk [vmem:[%s1855_s24 + $0x38] sm:$0xff] %vm564_vm1, %v1895_v0  ;;  %v788_v11 = vadd.f32 %v1313_v4, %v787_v1 }
 0x108   : > { %958 = vst.msk [vmem:[%s1855_s24 + $0x30] sm:$0xff] %vm564_vm1, %v1899_v3 }
 0x10a   : > { %655 = vrot.lane.b32.xlu0 %v1822_v34, %s1634_s15 }
 0x10b   : > { %595 = vrot.lane.b32.xlu1 %v561_v38, %s1632_s26 }
 0x10e   : > { %593 = vrot.lane.b32.xlu0 %v556_v41, %s1632_s26 }
 0x10f   : > { %620 = vrot.lane.b32.xlu1 %v541_v37, %s1633_s27 }
 0x112   : > { %618 = vrot.lane.b32.xlu0 %v536_v42, %s1633_s27 }
 0x113   : > { %628 = vrot.lane.b32.xlu1 %v561_v38, %s1633_s27 }
 0x116   : > { %626 = vrot.lane.b32.xlu0 %v556_v41, %s1633_s27 }
 0x117   : > { %653 = vrot.lane.b32.xlu1 %v541_v37, %s1634_s15 }
 0x11a   : > { %651 = vrot.lane.b32.xlu0 %v536_v42, %s1634_s15 }
 0x11b   : > { %661 = vrot.lane.b32.xlu1 %v561_v38, %s1634_s15 }
 0x11e   : > { %659 = vrot.lane.b32.xlu0 %v556_v41, %s1634_s15 }
 0x11f   : > { %585 = vrot.lane.b32.xlu1 %v536_v42, %s1632_s26 }
 0x123   : > { %970 = vrot.lane.b32.xlu1 %v1857_v46, %s1632_s26 }
 0x127   : > { %1003 = vrot.lane.b32.xlu1 %v1857_v46, %s1633_s27 }
 0x12b   : > { %968 = vrot.lane.b32.xlu1 %v1862_v49, %s1632_s26 }
 0x12f   : > { %1001 = vrot.lane.b32.xlu1 %v1862_v49, %s1633_s27 }
 0x133   : > { %974 = vrot.lane.b32.xlu1 %v1870_v52, %s1632_s26 }
 0x137   : > { %1007 = vrot.lane.b32.xlu1 %v1870_v52, %s1633_s27 }
 0x13b   : > { %972 = vrot.lane.b32.xlu1 %v1874_v55, %s1632_s26 }
 0x13c   : > { %796 = vxpose.xlu0.b32.start [1/8] (short) (narrow) %v758_v5, 32 }
 0x13f   : > { %1005 = vrot.lane.b32.xlu1 %v1874_v55, %s1633_s27 }
 0x140   : > { %797 = vxpose.xlu0.b32.cont [2/8] (short) (narrow) %v763_v6, 32 }
 0x143   : > { %978 = vrot.lane.b32.xlu1 %v1882_v58, %s1632_s26 }
 0x144   : > { %798 = vxpose.xlu0.b32.cont [3/8] (short) (narrow) %v768_v7, 32 }
 0x147   : > { %1011 = vrot.lane.b32.xlu1 %v1882_v58, %s1633_s27 }
 0x148   : > { %799 = vxpose.xlu0.b32.cont [4/8] (short) (narrow) %v773_v8, 32 }
 0x14b   : > { %976 = vrot.lane.b32.xlu1 %v1887_v61, %s1632_s26 }
 0x14c   : > { %800 = vxpose.xlu0.b32.cont [5/8] (short) (narrow) %v778_v9, 32 }
 0x14f   : > { %1009 = vrot.lane.b32.xlu1 %v1887_v61, %s1633_s27 }
 0x150   : > { %801 = vxpose.xlu0.b32.cont [6/8] (short) (narrow) %v783_v10, 32 }
 0x153   : > { %982 = vrot.lane.b32.xlu1 %v1895_v0, %s1632_s26 }
 0x154   : > { %802 = vxpose.xlu0.b32.cont [7/8] (short) (narrow) %v788_v11, 32 }
 0x157   : > { %980 = vrot.lane.b32.xlu1 %v1899_v3, %s1632_s26 }
 0x158   : > { %803 = vxpose.xlu0.b32.end [8/8] (short) (narrow) %v793_v12, 32 }
 0x15b   : > { %1013 = vrot.lane.b32.xlu1 %v1899_v3, %s1633_s27 }
 0x15f   : > { %1034 = vrot.lane.b32.xlu1 %v1862_v49, %s1634_s15 }
 0x163   : > { %1036 = vrot.lane.b32.xlu1 %v1857_v46, %s1634_s15 }
 0x164   : > { %v584_v14 = vpop.permute.xlu0 %583 }
 0x165   : > { %v592_v13 = vpop.permute.xlu1 %591  ;;  %1290 = vst.msk [vmem:[%s1820_s25 + $0x48] sm:$0xff] %vm564_vm1, %v584_v14 }
 0x166   : > { %1294 = vst.msk [vmem:[%s1820_s25 + $0x68] sm:$0xff] %vm564_vm1, %v592_v13 }
 0x167   : > { %1038 = vrot.lane.b32.xlu1 %v1874_v55, %s1634_s15 }
 0x168   : > { %v582_v16 = vpop.permute.xlu0 %581 }
 0x169   : > { %v617_v15 = vpop.permute.xlu1 %616  ;;  %1289 = vst.msk [vmem:[%s1820_s25 + $0x40] sm:$0xff] %vm564_vm1, %v582_v16 }
 0x16a   : > { %1298 = vst.msk [vmem:[%s1820_s25 + $0x88] sm:$0xff] %vm564_vm1, %v617_v15 }
 0x16b   : > { %1040 = vrot.lane.b32.xlu1 %v1870_v52, %s1634_s15 }
 0x16c   : > { %v590_v18 = vpop.permute.xlu0 %589 }
 0x16d   : > { %v625_v17 = vpop.permute.xlu1 %624  ;;  %1293 = vst.msk [vmem:[%s1820_s25 + $0x60] sm:$0xff] %vm564_vm1, %v590_v18 }
 0x16e   : > { %1302 = vst.msk [vmem:[%s1820_s25 + $0xa8] sm:$0xff] %vm564_vm1, %v625_v17 }
 0x16f   : > { %1042 = vrot.lane.b32.xlu1 %v1887_v61, %s1634_s15 }
 0x170   : > { %v615_v20 = vpop.permute.xlu0 %614 }
 0x171   : > { %v650_v19 = vpop.permute.xlu1 %649  ;;  %1297 = vst.msk [vmem:[%s1820_s25 + $0x80] sm:$0xff] %vm564_vm1, %v615_v20 }
 0x172   : > { %1306 = vst.msk [vmem:[%s1820_s25 + $0xc8] sm:$0xff] %vm564_vm1, %v650_v19 }
 0x173   : > { %1044 = vrot.lane.b32.xlu1 %v1882_v58, %s1634_s15 }
 0x174   : > { %v623_v22 = vpop.permute.xlu0 %622 }
 0x175   : > { %v658_v21 = vpop.permute.xlu1 %657  ;;  %1301 = vst.msk [vmem:[%s1820_s25 + $0xa0] sm:$0xff] %vm564_vm1, %v623_v22 }
 0x176   : > { %1310 = vst.msk [vmem:[%s1820_s25 + $0xe8] sm:$0xff] %vm564_vm1, %v658_v21 }
 0x177   : > { %1046 = vrot.lane.b32.xlu1 %v1899_v3, %s1634_s15 }
 0x178   : > { %v648_v24 = vpop.permute.xlu0 %647 }
 0x179   : > { %v588_v23 = vpop.permute.xlu1 %587  ;;  %1305 = vst.msk [vmem:[%s1820_s25 + $0xc0] sm:$0xff] %vm564_vm1, %v648_v24 }
 0x17a   : > { %1292 = vst.msk [vmem:[%s1820_s25 + $0x58] sm:$0xff] %vm564_vm1, %v588_v23 }
 0x17b   : > { %1048 = vrot.lane.b32.xlu1 %v1895_v0, %s1634_s15  ;;  %s2056_s15 = scalar_lea.hbm %s2135_s8, %s1366_s29 }
 0x17c   : > { %v656_v26 = vpop.permute.xlu0 %655 }
 0x17d   : > { %v596_v25 = vpop.permute.xlu1 %595  ;;  %1309 = vst.msk [vmem:[%s1820_s25 + $0xe0] sm:$0xff] %vm564_vm1, %v656_v26 }
 0x17e   : > { %1296 = vst.msk [vmem:[%s1820_s25 + $0x78] sm:$0xff] %vm564_vm1, %v596_v25 }
 0x180   : > { %v594_v28 = vpop.permute.xlu0 %593 }
 0x181   : > { %v621_v27 = vpop.permute.xlu1 %620  ;;  %1295 = vst.msk [vmem:[%s1820_s25 + $0x70] sm:$0xff] %vm564_vm1, %v594_v28  ;;  %1015 = vrot.lane.b32.xlu0 %v1895_v0, %s1633_s27 }
 0x182   : > { %1300 = vst.msk [vmem:[%s1820_s25 + $0x98] sm:$0xff] %vm564_vm1, %v621_v27 }
 0x184   : > { %v619_v30 = vpop.permute.xlu0 %618 }
 0x185   : > { %v629_v29 = vpop.permute.xlu1 %628  ;;  %1299 = vst.msk [vmem:[%s1820_s25 + $0x90] sm:$0xff] %vm564_vm1, %v619_v30 }
 0x186   : > { %1304 = vst.msk [vmem:[%s1820_s25 + $0xb8] sm:$0xff] %vm564_vm1, %v629_v29 }
 0x188   : > { %v627_v32 = vpop.permute.xlu0 %626 }
 0x189   : > { %v654_v31 = vpop.permute.xlu1 %653  ;;  %1303 = vst.msk [vmem:[%s1820_s25 + $0xb0] sm:$0xff] %vm564_vm1, %v627_v32 }
 0x18a   : > { %1308 = vst.msk [vmem:[%s1820_s25 + $0xd8] sm:$0xff] %vm564_vm1, %v654_v31 }
 0x18c   : > { %v652_v34 = vpop.permute.xlu0 %651 }
 0x18d   : > { %v662_v33 = vpop.permute.xlu1 %661  ;;  %1307 = vst.msk [vmem:[%s1820_s25 + $0xd0] sm:$0xff] %vm564_vm1, %v652_v34 }
 0x18e   : > { %1312 = vst.msk [vmem:[%s1820_s25 + $0xf8] sm:$0xff] %vm564_vm1, %v662_v33 }
 0x190   : > { %v660_v36 = vpop.permute.xlu0 %659 }
 0x191   : > { %v586_v35 = vpop.permute.xlu1 %585  ;;  %1311 = vst.msk [vmem:[%s1820_s25 + $0xf0] sm:$0xff] %vm564_vm1, %v660_v36 }
 0x192   : > { %1291 = vst.msk [vmem:[%s1820_s25 + $0x50] sm:$0xff] %vm564_vm1, %v586_v35  ;;  %s365_s25 = sand.u32 1, %s1614_s10  }
 0x193   : > { %s1271_s26 = sshll.u32 %s365_s25, 5  ;;  %s2061_s12 = scalar_lea.sflag [#allocation3], %s365_s25 }
 0x194   : > { %s367_s27 = scalar_lea.vmem [#allocation2], %s1271_s26  ;;  %s1556_s26 = sshll.u32 %s1635_s16, 4  ;;  %s1557_s26 = int_to_ptr.vmem [resolvable:$false] %s1556_s26 }
 0x195   : > { %v971_v37 = vpop.permute.xlu1 %970  ;;  %s1107_s28 = sshll.u32 %s367_s27, 4  ;;  %s1558_s20 = scalar_lea.vmem %s1557_s26, 1024  ;;  %s2051_s28 = int_to_ptr.vmem [resolvable:$true] %s1107_s28 }
 0x196   : > { %1335 = vst.msk [vmem:[%s1855_s24 + $0x48] sm:$0xff] %vm564_vm1, %v971_v37  ;;  %s1552_s18 = scalar_lea.vmem %s2051_s28, 512  ;;  %p1559_p2 = scmp.lt.s32.totalorder %s2051_s28, %s1557_s26 }
 0x197   : > { %p1553_p13 = scmp.ne.s32.totalorder %s2051_s28, %s1552_s18  ;;  %p1560_p3 = scmp.lt.s32.totalorder %s1558_s20, %s1552_s18 }
 0x199   : > { %v1004_v38 = vpop.permute.xlu1 %1003  ;;  %p1554_p0 = pnand %p1553_p13, %p1728_p4  ;;  %p1561_p5 = por %p1560_p3, %p1559_p2 }
 0x19a   : > { %1343 = vst.msk [vmem:[%s1855_s24 + $0x88] sm:$0xff] %vm564_vm1, %v1004_v38 }
 0x19b   : > { %p1555_p1 = pneg %p1554_p0 }
 0x19d   : > { %v969_v39 = vpop.permute.xlu1 %968  ;;  %p1562_p6 = pnand %p1561_p5, %p1555_p1 }
 0x19e   : > { %1334 = vst.msk [vmem:[%s1855_s24 + $0x40] sm:$0xff] %vm564_vm1, %v969_v39 }
 0x1a1   : > { %v1002_v40 = vpop.permute.xlu1 %1001 }
 0x1a2   : > { %1342 = vst.msk [vmem:[%s1855_s24 + $0x80] sm:$0xff] %vm564_vm1, %v1002_v40 }
 0x1a5   : > { %v975_v41 = vpop.permute.xlu1 %974 }
 0x1a6   : > { %1337 = vst.msk [vmem:[%s1855_s24 + $0x58] sm:$0xff] %vm564_vm1, %v975_v41 }
 0x1a9   : > { %v1008_v42 = vpop.permute.xlu1 %1007 }
 0x1aa   : > { %1345 = vst.msk [vmem:[%s1855_s24 + $0x98] sm:$0xff] %vm564_vm1, %v1008_v42 }
 0x1ad   : > { %v973_v43 = vpop.permute.xlu1 %972 }
 0x1ae   : > { %1336 = vst.msk [vmem:[%s1855_s24 + $0x50] sm:$0xff] %vm564_vm1, %v973_v43 }
 0x1b1   : > { %v1006_v44 = vpop.permute.xlu1 %1005 }
 0x1b2   : > { %1344 = vst.msk [vmem:[%s1855_s24 + $0x90] sm:$0xff] %vm564_vm1, %v1006_v44 }
 0x1b5   : > { %v979_v45 = vpop.permute.xlu1 %978 }
 0x1b6   : > { %1339 = vst.msk [vmem:[%s1855_s24 + $0x68] sm:$0xff] %vm564_vm1, %v979_v45 }
 0x1b9   : > { %v1012_v46 = vpop.permute.xlu1 %1011 }
 0x1ba   : > { %1347 = vst.msk [vmem:[%s1855_s24 + $0xa8] sm:$0xff] %vm564_vm1, %v1012_v46 }
 0x1bc   : > { %v812_v48 = vpop.trf.xlu0 }
 0x1bd   : > { %v977_v47 = vpop.permute.xlu1 %976  ;;  %829 = vst.msk [vmem:[%s367_s27] sm:$0xff] %vm828_vm2, %v812_v48 }
 0x1be   : > { %1338 = vst.msk [vmem:[%s1855_s24 + $0x60] sm:$0xff] %vm564_vm1, %v977_v47 }
 0x1c0   : > { %v813_v50 = vpop.trf.xlu0 }
 0x1c1   : > { %v1010_v49 = vpop.permute.xlu1 %1009  ;;  %1322 = vst.msk [vmem:[%s367_s27 + $0x8] sm:$0xff] %vm828_vm2, %v813_v50 }
 0x1c2   : > { %1346 = vst.msk [vmem:[%s1855_s24 + $0xa0] sm:$0xff] %vm564_vm1, %v1010_v49 }
 0x1c4   : > { %v814_v52 = vpop.trf.xlu0 }
 0x1c5   : > { %v983_v51 = vpop.permute.xlu1 %982  ;;  %1323 = vst.msk [vmem:[%s367_s27 + $0x10] sm:$0xff] %vm828_vm2, %v814_v52 }
 0x1c6   : > { %1341 = vst.msk [vmem:[%s1855_s24 + $0x78] sm:$0xff] %vm564_vm1, %v983_v51 }
 0x1c8   : > { %v815_v54 = vpop.trf.xlu0 }
 0x1c9   : > { %v981_v53 = vpop.permute.xlu1 %980  ;;  %1324 = vst.msk [vmem:[%s367_s27 + $0x18] sm:$0xff] %vm828_vm2, %v815_v54 }
 0x1ca   : > { %1340 = vst.msk [vmem:[%s1855_s24 + $0x70] sm:$0xff] %vm564_vm1, %v981_v53 }
 0x1cb   : > { %1565 = shalt.err (!%p1562_p6)
}
 0x1cc   : > { %s1566_s25 = scalar_lea.hbm %s2056_s15, 512  ;;  %s1570_s23 = scalar_lea.hbm %s2135_s8, 1024 }
 0x1cd   : > { %p1567_p7 = scmp.ne.s32.totalorder %s2056_s15, %s1566_s25  ;;  %p1571_p11 = scmp.lt.u32.totalorder %s2056_s15, %s2135_s8 }
 0x1ce   : > { %p1572_p12 = scmp.lt.u32.totalorder %s1570_s23, %s1566_s25  ;;  %p1574_p0 = scmp.lt.u32.totalorder %s1566_s25, %s2056_s15 }
 0x1cf   : > { %p1568_p9 = pnand %p1567_p7, %p1728_p4 }
 0x1d0   : > { %p1573_p13 = por %p1572_p12, %p1571_p11 }
 0x1d1   : > { %p1569_p10 = pneg %p1568_p9 }
 0x1d2   : > { %p1575_p1 = por %p1574_p0, %p1573_p13 }
 0x1d4   : > { %p1576_p2 = pnand %p1575_p1, %p1569_p10 }
 0x1d6   : > { %1579 = shalt.err (!%p1576_p2)
}
 0x1d7   : > { %s1636_s18 = smov 128   ;;  %s1637_s20 = smov 8   ;;  %v1014_v55 = vpop.permute.xlu1 %1013 }
 0x1d8   : > { %1491 = dma.vmem_to_hbm [thread:$0]  (%p1728_p4), %s2051_s28, 512, %s2056_s15, %s2061_s12, %s1636_s18, %s1636_s18, %s1637_s20  }
 0x1d9   : > { %1348 = vst.msk [vmem:[%s1855_s24 + $0xb0] sm:$0xff] %vm564_vm1, %v1014_v55 }
 0x1db   : > { %v1035_v56 = vpop.permute.xlu1 %1034 }
 0x1dc   : > { %1350 = vst.msk [vmem:[%s1855_s24 + $0xc0] sm:$0xff] %vm564_vm1, %v1035_v56 }
 0x1df   : > { %v1037_v57 = vpop.permute.xlu1 %1036 }
 0x1e0   : > { %1351 = vst.msk [vmem:[%s1855_s24 + $0xc8] sm:$0xff] %vm564_vm1, %v1037_v57 }
 0x1e3   : > { %v1039_v58 = vpop.permute.xlu1 %1038 }
 0x1e4   : > { %1352 = vst.msk [vmem:[%s1855_s24 + $0xd0] sm:$0xff] %vm564_vm1, %v1039_v58 }
 0x1e7   : > { %v1041_v59 = vpop.permute.xlu1 %1040 }
 0x1e8   : > { %1353 = vst.msk [vmem:[%s1855_s24 + $0xd8] sm:$0xff] %vm564_vm1, %v1041_v59 }
 0x1eb   : > { %v1043_v60 = vpop.permute.xlu1 %1042 }
 0x1ec   : > { %1354 = vst.msk [vmem:[%s1855_s24 + $0xe0] sm:$0xff] %vm564_vm1, %v1043_v60 }
 0x1ef   : > { %v1045_v61 = vpop.permute.xlu1 %1044 }
 0x1f0   : > { %1355 = vst.msk [vmem:[%s1855_s24 + $0xe8] sm:$0xff] %vm564_vm1, %v1045_v61 }
 0x1f3   : > { %v1047_v62 = vpop.permute.xlu1 %1046  ;;  %v1016_v63 = vpop.permute.xlu0 %1015 }
 0x1f4   : > { %1356 = vst.msk [vmem:[%s1855_s24 + $0xf0] sm:$0xff] %vm564_vm1, %v1047_v62  ;;  %1349 = vst.msk [vmem:[%s1855_s24 + $0xb8] sm:$0xff] %vm564_vm1, %v1016_v63 }
 0x1f7   : > { %v1049_v0 = vpop.permute.xlu1 %1048 }
 0x1f8   : > { %1357 = vst.msk [vmem:[%s1855_s24 + $0xf8] sm:$0xff] %vm564_vm1, %v1049_v0 }
 0x1f9 PF: > { %p1497_p4 = scmp.ge.s32.totalorder %s1630_s14, 2  ;;  %s1140_s19 = sand.u32 1, %s1610_s30  }
 0x1fa   : > { %s1141_s28 = scalar_lea.sflag [#allocation3], %s1140_s19 }
 0x1fb   : > { %p1494_p3 = pnand %p1497_p4, %p1735_p8 }
 0x1fd   : > { %1605 = dma.done.wait (!%p1494_p3), %s1141_s28, 512  }
 0x1fe   : > { %1607 = vsyncadd (!%p1494_p3), %s1141_s28, 4294966784  ;;  %s23_s14 = sadd.s32 1, %s1630_s14   ;;  %s2139_s30 = smov %s1614_s10 }
 0x1ff   : > { %p20_p5 = scmp.ge.s32.totalorder %s23_s14, 4   ;;  %s2140_s10 = smov %s1618_s11 }
 0x200   : > { %s2141_s11 = smov %s1741_s22  ;;  %s2142_s12 = smov %s1626_s13 }
 0x201   : > { %s2143_s13 = smov %s2145_s17  ;;  %22 = sbr.rel (!%p20_p5) target bundleno = 4 (0x4), region = 116 }
 0x208   :  { %1159 = vsyncpa [#allocation3], 1 }
 0x209   :  { %1161 = vsyncpa [#allocation3 + $0x1], 1 }

// kernel: tpu_custom_call.1
= control target key start
LH: loop header
LB: loop body
LE: loop exit
PB: predicated region body
PF: predicated region fallthrough
CT: control target
= control target key end

     0   :  { %15 = vsyncpa [#allocation3], 0  ;;  %s2127_s0 = inlined_call_operand.vmem [shape: f32[2,64,32], index: 0, kind: input, shape index: {}]   ;;  %s2128_s1 = inlined_call_operand.vmem [shape: f32[32,32], index: 1, kind: input, shape index: {}]   ;;  %s2129_s2 = inlined_call_operand.vmem [shape: f32[32,32], index: 2, kind: input, shape index: {}]   ;;  %s2130_s3 = inlined_call_operand.vmem [shape: f32[32,32], index: 3, kind: input, shape index: {}]   ;;  %s2131_s4 = inlined_call_operand.vmem [shape: f32[1,32], index: 4, kind: input, shape index: {}]   ;;  %s2132_s5 = inlined_call_operand.vmem [shape: f32[1,32], index: 5, kind: input, shape index: {}]   ;;  %s2133_s6 = inlined_call_operand.vmem [shape: f32[1,32], index: 6, kind: input, shape index: {}]   ;;  %s2134_s7 = inlined_call_operand.vmem [shape: f32[8,64,8], index: 7, kind: output, shape index: {0}]   ;;  %s2135_s8 = inlined_call_operand.hbm [shape: f32[8,8,64], index: 8, kind: output, shape index: {1}]   ;;  %s2136_s9 = inlined_call_operand.vmem [shape: f32[8,64,8], index: 9, kind: output, shape index: {2}]  }
   0x1   :  { %17 = vsyncpa [#allocation3 + $0x1], 0  ;;  %s1688_s30 = smov 0   ;;  %s1690_s10 = smov 0  }
   0x2   :  { %s1692_s11 = smov 0   ;;  %s1694_s12 = smov 0  }
   0x3   :  { %s1696_s13 = smov 0   ;;  %s1698_s14 = smov 0  }
   0x4 LB: > { %s1266_s15 = sadd.s32 4294967295, %s1630_s14   ;;  %s1267_s16 = sadd.s32 4294967294, %s1630_s14   ;;  %s1630_s14 = sphi %s1698_s14, %s23_s14   ;;  %s1626_s13 = sphi %s1696_s13, %s2143_s13   ;;  %s1622_s12 = sphi %s1694_s12, %s2142_s12   ;;  %s1618_s11 = sphi %s1692_s11, %s2141_s11   ;;  %s1614_s10 = sphi %s1690_s10, %s2140_s10   ;;  %s1610_s30 = sphi %s1688_s30, %s2139_s30  }
   0x5   : > { %s35_s17 = sadd.s32 1, %s1626_s13  ;;  %s226_s18 = sadd.s32 1, %s1618_s11 }
   0x6   : > { %p37_p0 = scmp.ge.s32.totalorder %s35_s17, 2  ;;  %p236_p1 = scmp.ne.s32.totalorder %s1618_s11, %s1614_s10 }
   0x7   : > { %p237_p2 = scmp.eq.s32.totalorder %s1266_s15, 1  ;;  %p242_p3 = scmp.ne.s32.totalorder %s1614_s10, %s1610_s30 }
   0x8   : > { %s2145_s17 = smov (%p37_p0, %s35_s17), 0  ;;  %p243_p5 = scmp.eq.s32.totalorder %s1267_s16, 1 }
   0x9   : > { %p1728_p4 = por %p237_p2, %p236_p1  ;;  %s221_s20 = ssub.s32 %s1626_s13, %s2145_s17 }
   0xa   : > { %p1270_p6 = scmp.ge.s32.totalorder %s1630_s14, 1  ;;  %p224_p7 = scmp.eq.s32.totalorder %s221_s20, 0 }
   0xb   : > { %p1735_p8 = por %p243_p5, %p242_p3  ;;  %p320_p9 = scmp.lt.s32.totalorder %s1630_s14, 3 }
   0xc   : > { %s1741_s22 = scalar_select %p224_p7, %s1618_s11, %s226_s18  }
   0xd   : > { %p321_p10 = pnand %p1270_p6, %p320_p9 }
   0xe   : > { %v423_v0 = vld [vmem:[%s2128_s1] sm:$0xff] (!%p321_p10)  ;;  %v424_v1 = vld [vmem:[%s2128_s1 + $0x8] sm:$0xff] (!%p321_p10)  ;;  %v425_v2 = vld [vmem:[%s2128_s1 + $0x10] sm:$0xff] (!%p321_p10)  ;;  %p381_p11 = scmp.lt.s32.totalorder (!%p321_p10), %s1622_s12, 1  ;;  %vm434_vm0 = vcmask (!%p321_p10), 261120   ;;  %s1274_s15 = sshll.u32 (!%p321_p10), %s1622_s12, 2 }
   0xf   : > { %324 = sbr.rel (%p321_p10) target bundleno = 505 (0x1f9), region = 48  ;;  %v1463_v3 = vpack.c.bf16 (!%p321_p10), %v424_v1, %v423_v0  ;;  %v426_v4 = vld [vmem:[%s2128_s1 + $0x18] sm:$0xff] (!%p321_p10)  ;;  %v836_v6 = vld [vmem:[%s2130_s3] sm:$0xff] (!%p321_p10)  ;;  %v837_v7 = vld [vmem:[%s2130_s3 + $0x8] sm:$0xff] (!%p321_p10)  ;;  %p392_p12 = scmp.lt.s32.totalorder (!%p321_p10), %s1274_s15, 7  ;;  %vm564_vm1 = vcmask (!%p321_p10), 64512  }
  0x10   : > { %v1467_v5 = vpack.c.bf16 (!%p321_p10), %v426_v4, %v425_v2  ;;  %v680_v8 = vld [vmem:[%s2129_s2] sm:$0xff] (!%p321_p10)  ;;  %v681_v9 = vld [vmem:[%s2129_s2 + $0x8] sm:$0xff] (!%p321_p10)  ;;  %v1479_v10 = vpack.c.bf16 (!%p321_p10), %v837_v7, %v836_v6  ;;  %v838_v14 = vld [vmem:[%s2130_s3 + $0x10] sm:$0xff] (!%p321_p10)  ;;  %s1632_s26 = smov (!%p321_p10), 120   ;;  %s1633_s27 = smov (!%p321_p10), 112   ;;  %vm828_vm2 = vcmask (!%p321_p10), 523264  }
  0x11   : > { %1464 = vmatprep.subr.bf16.mxu0 (!%p321_p10), %v1463_v3  ;;  %1487 = vmatprep.subr.bf16.mxu1 (!%p321_p10), %v1463_v3  ;;  %v1471_v11 = vpack.c.bf16 (!%p321_p10), %v681_v9, %v680_v8  ;;  %v839_v15 = vld [vmem:[%s2130_s3 + $0x18] sm:$0xff] (!%p321_p10)  ;;  %v682_v16 = vld [vmem:[%s2129_s2 + $0x10] sm:$0xff] (!%p321_p10)  ;;  %v1280_v26 = vld [vmem:[%s2131_s4] ss:$0 sm:$0xff] (!%p321_p10) }
  0x12   : > { %1466 = vmatpush3.bf16.msra.mxu0 (!%p321_p10), %v1463_v3  ;;  %1489 = vmatpush3.bf16.msra.mxu1 (!%p321_p10), %v1463_v3  ;;  %v683_v17 = vld [vmem:[%s2129_s2 + $0x18] sm:$0xff] (!%p321_p10)  ;;  %v1483_v22 = vpack.c.bf16 (!%p321_p10), %v839_v15, %v838_v14  ;;  %v1325_v43 = vld [vmem:[%s2133_s6] ss:$0 sm:$0xff] (!%p321_p10) }
  0x13   : > { %1468 = vmatprep.subr.bf16.mxu0 (!%p321_p10), %v1467_v5  ;;  %1488 = vmatprep.subr.bf16.mxu1 (!%p321_p10), %v1467_v5  ;;  %v1475_v23 = vpack.c.bf16 (!%p321_p10), %v683_v17, %v682_v16  ;;  %v1313_v4 = vld [vmem:[%s2132_s5] ss:$0 sm:$0xff] (!%p321_p10) }
  0x16   : > { %s382_s16 = scalar_select %p381_p11, %s1622_s12, 1  ;;  %1470 = vmatpush3.bf16.msra.mxu0 %v1467_v5  ;;  %1490 = vmatpush3.bf16.msra.mxu1 %v1467_v5 }
  0x17   : > { %1480 = vmatprep.subr.bf16.mxu0 %v1479_v10  ;;  %1472 = vmatprep.subr.bf16.mxu1 %v1471_v11  ;;  %s2147_s15 = smov (!%p392_p12, %s1274_s15), 7 }
  0x18   : > { %s1363_s29 = sshll.u32 %s382_s16, 6  ;;  %s1364_s18 = sshll.u32 %s2147_s15, 6 }
  0x19   : > { %s388_s20 = scalar_lea.vmem %s2127_s0, %s1363_s29  ;;  %s1820_s25 = scalar_lea.vmem %s2134_s7, %s1364_s18 }
  0x1a   : > { %v415_v12 = vld [vmem:[%s388_s20] sm:$0xff]  ;;  %v416_v18 = vld [vmem:[%s388_s20 + $0x8] sm:$0xff]  ;;  %v417_v20 = vld [vmem:[%s388_s20 + $0x10] sm:$0xff]  ;;  %s1855_s24 = scalar_lea.vmem %s2136_s9, %s1364_s18  ;;  %s1634_s15 = smov 104  }
  0x1b   : > { %v419_v13 = vld [vmem:[%s388_s20 + $0x20] sm:$0xff]  ;;  %1411 = vmatprep.mubr.msk.f32.mxu0 %vm434_vm0, %v415_v12  ;;  %v420_v19 = vld [vmem:[%s388_s20 + $0x28] sm:$0xff]  ;;  %v421_v21 = vld [vmem:[%s388_s20 + $0x30] sm:$0xff]  ;;  %s1366_s29 = sshll.u32 %s1622_s12, 9  ;;  %s1635_s16 = smov [#allocation2]  }
  0x1c   : > { %1417 = vmatprep.mubr.msk.f32.mxu1 %vm434_vm0, %v419_v13  ;;  %1412 = vmatmul.mubr.msk.f32.vlgmr.msra.gmra.mrb[0].mxu0 %vm434_vm0, %v416_v18  ;;  %v418_v24 = vld [vmem:[%s388_s20 + $0x18] sm:$0xff] }
  0x1d   : > { %1418 = vmatmul.mubr.msk.f32.vlgmr.msra.gmra.mrb[0].mxu1 %vm434_vm0, %v420_v19  ;;  %1414 = vmatprep.mubr.msk.f32.mxu0 %vm434_vm0, %v417_v20  ;;  %v422_v25 = vld [vmem:[%s388_s20 + $0x38] sm:$0xff] }
  0x1e   : > { %1420 = vmatprep.mubr.msk.f32.mxu1 %vm434_vm0, %v421_v21  ;;  %1482 = vmatpush3.bf16.msra.mxu0 %v1479_v10 }
  0x1f   : > { %1474 = vmatpush3.bf16.msra.mxu1 %v1471_v11  ;;  %1484 = vmatprep.subr.bf16.mxu0 %v1483_v22 }
  0x20   : > { %1476 = vmatprep.subr.bf16.mxu1 %v1475_v23  ;;  %1415 = vmatmul.mubr.msk.f32.gmra.mrb[2].mxu0 %vm434_vm0, %v418_v24 }
  0x21   : > { %1421 = vmatmul.mubr.msk.f32.gmra.mrb[2].mxu1 %vm434_vm0, %v422_v25  ;;  %1451 = vmatprep.mubr.msk.f32.mxu0 %vm434_vm0, %v415_v12 }
  0x22   : > { %1431 = vmatprep.mubr.msk.f32.mxu1 %vm434_vm0, %v415_v12  ;;  %1486 = vmatpush3.bf16.msra.mxu0 %v1483_v22 }
  0x23   : > { %1478 = vmatpush3.bf16.msra.mxu1 %v1475_v23 }
  0x25   : > { %1452 = vmatmul.mubr.msk.f32.vlgmr.msra.gmra.mrb[4].mxu0 %vm434_vm0, %v416_v18 }
  0x26   : > { %1432 = vmatmul.mubr.msk.f32.vlgmr.msra.gmra.mrb[4].mxu1 %vm434_vm0, %v416_v18  ;;  %1454 = vmatprep.mubr.msk.f32.mxu0 %vm434_vm0, %v417_v20 }
  0x27   : > { %1434 = vmatprep.mubr.msk.f32.mxu1 %vm434_vm0, %v417_v20 }
  0x29   : > { %1455 = vmatmul.mubr.msk.f32.gmra.mrb[6].mxu0 %vm434_vm0, %v418_v24 }
  0x2a   : > { %1435 = vmatmul.mubr.msk.f32.gmra.mrb[6].mxu1 %vm434_vm0, %v418_v24  ;;  %1457 = vmatprep.mubr.msk.f32.mxu0 %vm434_vm0, %v419_v13 }
  0x2b   : > { %1437 = vmatprep.mubr.msk.f32.mxu1 %vm434_vm0, %v419_v13 }
  0x2d   : > { %1458 = vmatmul.mubr.msk.f32.gmra.mrb[8].mxu0 %vm434_vm0, %v420_v19 }
  0x2e   : > { %1438 = vmatmul.mubr.msk.f32.gmra.mrb[8].mxu1 %vm434_vm0, %v420_v19  ;;  %1460 = vmatprep.mubr.msk.f32.mxu0 %vm434_vm0, %v421_v21 }
  0x2f   : > { %1440 = vmatprep.mubr.msk.f32.mxu1 %vm434_vm0, %v421_v21 }
  0x31   : > { %1461 = vmatmul.mubr.msk.f32.gmra.mrb[10].mxu0 %vm434_vm0, %v422_v25 }
  0x32   : > { %1441 = vmatmul.mubr.msk.f32.gmra.mrb[10].mxu1 %vm434_vm0, %v422_v25 }
  0xef   : > { %v1413_v27 = vpop.f32.mrb[0].mxu0 }
  0xf0   : > { %v1419_v28 = vpop.f32.mrb[0].mxu1  ;;  %v531_v29 = vadd.f32 %v1413_v27, %v1280_v26  ;;  %v525_v31 = vpop.f32.mrb[1].mxu0 }
  0xf1   : > { %v551_v30 = vadd.f32 %v1419_v28, %v1280_v26  ;;  %v545_v32 = vpop.f32.mrb[1].mxu1  ;;  %v526_v33 = vadd.f32 %v1280_v26, %v525_v31 }
  0xf2   : > { %v1822_v34 = vadd.f32 %v1280_v26, %v545_v32  ;;  %583 = vrot.lane.b32.xlu0 %v531_v29, %s1632_s26  ;;  %566 = vst.msk [vmem:[%s1820_s25 + $0x8] sm:$0xff] %vm564_vm1, %v531_v29 }
  0xf3   : > { %591 = vrot.lane.b32.xlu1 %v551_v30, %s1632_s26  ;;  %570 = vst.msk [vmem:[%s1820_s25 + $0x28] sm:$0xff] %vm564_vm1, %v551_v30  ;;  %v1416_v35 = vpop.f32.mrb[2].mxu0  ;;  %565 = vst.msk [vmem:[%s1820_s25] sm:$0xff] %vm564_vm1, %v526_v33 }
  0xf4   : > { %v1422_v36 = vpop.f32.mrb[2].mxu1  ;;  %569 = vst.msk [vmem:[%s1820_s25 + $0x20] sm:$0xff] %vm564_vm1, %v1822_v34  ;;  %v541_v37 = vadd.f32 %v1416_v35, %v1280_v26  ;;  %v535_v40 = vpop.f32.mrb[3].mxu0 }
  0xf5   : > { %v561_v38 = vadd.f32 %v1422_v36, %v1280_v26  ;;  %v555_v39 = vpop.f32.mrb[3].mxu1  ;;  %v536_v42 = vadd.f32 %v1280_v26, %v535_v40 }
  0xf6   : > { %v556_v41 = vadd.f32 %v1280_v26, %v555_v39  ;;  %581 = vrot.lane.b32.xlu0 %v526_v33, %s1632_s26  ;;  %568 = vst.msk [vmem:[%s1820_s25 + $0x18] sm:$0xff] %vm564_vm1, %v541_v37 }
  0xf7   : > { %616 = vrot.lane.b32.xlu1 %v531_v29, %s1633_s27  ;;  %572 = vst.msk [vmem:[%s1820_s25 + $0x38] sm:$0xff] %vm564_vm1, %v561_v38  ;;  %567 = vst.msk [vmem:[%s1820_s25 + $0x10] sm:$0xff] %vm564_vm1, %v536_v42 }
  0xf8   : > { %571 = vst.msk [vmem:[%s1820_s25 + $0x30] sm:$0xff] %vm564_vm1, %v556_v41  ;;  %v1453_v44 = vpop.f32.mrb[4].mxu0 }
  0xf9   : > { %v1848_v45 = vpop.f32.mrb[4].mxu1  ;;  %v1857_v46 = vadd.f32 %v1453_v44, %v1325_v43  ;;  %v913_v47 = vpop.f32.mrb[5].mxu0 }
  0xfa   : > { %v757_v48 = vpop.f32.mrb[5].mxu1  ;;  %589 = vrot.lane.b32.xlu0 %v1822_v34, %s1632_s26  ;;  %v1862_v49 = vadd.f32 %v1325_v43, %v913_v47  ;;  %v763_v6 = vadd.f32 %v1848_v45, %v1313_v4 }
  0xfb   : > { %624 = vrot.lane.b32.xlu1 %v551_v30, %s1633_s27  ;;  %953 = vst.msk [vmem:[%s1855_s24 + $0x8] sm:$0xff] %vm564_vm1, %v1857_v46  ;;  %v758_v5 = vadd.f32 %v1313_v4, %v757_v48 }
  0xfc   : > { %v1456_v50 = vpop.f32.mrb[6].mxu0  ;;  %952 = vst.msk [vmem:[%s1855_s24] sm:$0xff] %vm564_vm1, %v1862_v49 }
  0xfd   : > { %v1436_v51 = vpop.f32.mrb[6].mxu1  ;;  %v1870_v52 = vadd.f32 %v1456_v50, %v1325_v43  ;;  %v923_v53 = vpop.f32.mrb[7].mxu0 }
  0xfe   : > { %v767_v54 = vpop.f32.mrb[7].mxu1  ;;  %614 = vrot.lane.b32.xlu0 %v526_v33, %s1633_s27  ;;  %v1874_v55 = vadd.f32 %v1325_v43, %v923_v53  ;;  %v773_v8 = vadd.f32 %v1436_v51, %v1313_v4 }
  0xff   : > { %649 = vrot.lane.b32.xlu1 %v531_v29, %s1634_s15  ;;  %955 = vst.msk [vmem:[%s1855_s24 + $0x18] sm:$0xff] %vm564_vm1, %v1870_v52  ;;  %v768_v7 = vadd.f32 %v1313_v4, %v767_v54 }
 0x100   : > { %v1459_v56 = vpop.f32.mrb[8].mxu0  ;;  %954 = vst.msk [vmem:[%s1855_s24 + $0x10] sm:$0xff] %vm564_vm1, %v1874_v55 }
 0x101   : > { %v1439_v57 = vpop.f32.mrb[8].mxu1  ;;  %v1882_v58 = vadd.f32 %v1459_v56, %v1325_v43  ;;  %v933_v59 = vpop.f32.mrb[9].mxu0 }
 0x102   : > { %v777_v60 = vpop.f32.mrb[9].mxu1  ;;  %622 = vrot.lane.b32.xlu0 %v1822_v34, %s1633_s27  ;;  %v1887_v61 = vadd.f32 %v1325_v43, %v933_v59  ;;  %v783_v10 = vadd.f32 %v1439_v57, %v1313_v4 }
 0x103   : > { %657 = vrot.lane.b32.xlu1 %v551_v30, %s1634_s15  ;;  %957 = vst.msk [vmem:[%s1855_s24 + $0x28] sm:$0xff] %vm564_vm1, %v1882_v58  ;;  %v778_v9 = vadd.f32 %v1313_v4, %v777_v60 }
 0x104   : > { %v1462_v63 = vpop.f32.mrb[10].mxu0  ;;  %956 = vst.msk [vmem:[%s1855_s24 + $0x20] sm:$0xff] %vm564_vm1, %v1887_v61 }
 0x105   : > { %v1442_v62 = vpop.f32.mrb[10].mxu1  ;;  %v1895_v0 = vadd.f32 %v1462_v63, %v1325_v43  ;;  %v943_v2 = vpop.f32.mrb[11].mxu0 }
 0x106   : > { %v787_v1 = vpop.f32.mrb[11].mxu1  ;;  %647 = vrot.lane.b32.xlu0 %v526_v33, %s1634_s15  ;;  %v1899_v3 = vadd.f32 %v1325_v43, %v943_v2  ;;  %v793_v12 = vadd.f32 %v1442_v62, %v1313_v4 }
 0x107   : > { %587 = vrot.lane.b32.xlu1 %v541_v37, %s1632_s26  ;;  %959 = vst.msk [vmem:[%s1855_s24 + $0x38] sm:$0xff] %vm564_vm1, %v1895_v0  ;;  %v788_v11 = vadd.f32 %v1313_v4, %v787_v1 }
 0x108   : > { %958 = vst.msk [vmem:[%s1855_s24 + $0x30] sm:$0xff] %vm564_vm1, %v1899_v3 }
 0x10a   : > { %655 = vrot.lane.b32.xlu0 %v1822_v34, %s1634_s15 }
 0x10b   : > { %595 = vrot.lane.b32.xlu1 %v561_v38, %s1632_s26 }
 0x10e   : > { %593 = vrot.lane.b32.xlu0 %v556_v41, %s1632_s26 }
 0x10f   : > { %620 = vrot.lane.b32.xlu1 %v541_v37, %s1633_s27 }
 0x112   : > { %618 = vrot.lane.b32.xlu0 %v536_v42, %s1633_s27 }
 0x113   : > { %628 = vrot.lane.b32.xlu1 %v561_v38, %s1633_s27 }
 0x116   : > { %626 = vrot.lane.b32.xlu0 %v556_v41, %s1633_s27 }
 0x117   : > { %653 = vrot.lane.b32.xlu1 %v541_v37, %s1634_s15 }
 0x11a   : > { %651 = vrot.lane.b32.xlu0 %v536_v42, %s1634_s15 }
 0x11b   : > { %661 = vrot.lane.b32.xlu1 %v561_v38, %s1634_s15 }
 0x11e   : > { %659 = vrot.lane.b32.xlu0 %v556_v41, %s1634_s15 }
 0x11f   : > { %585 = vrot.lane.b32.xlu1 %v536_v42, %s1632_s26 }
 0x123   : > { %970 = vrot.lane.b32.xlu1 %v1857_v46, %s1632_s26 }
 0x127   : > { %1003 = vrot.lane.b32.xlu1 %v1857_v46, %s1633_s27 }
 0x12b   : > { %968 = vrot.lane.b32.xlu1 %v1862_v49, %s1632_s26 }
 0x12f   : > { %1001 = vrot.lane.b32.xlu1 %v1862_v49, %s1633_s27 }
 0x133   : > { %974 = vrot.lane.b32.xlu1 %v1870_v52, %s1632_s26 }
 0x137   : > { %1007 = vrot.lane.b32.xlu1 %v1870_v52, %s1633_s27 }
 0x13b   : > { %972 = vrot.lane.b32.xlu1 %v1874_v55, %s1632_s26 }
 0x13c   : > { %796 = vxpose.xlu0.b32.start [1/8] (short) (narrow) %v758_v5, 32 }
 0x13f   : > { %1005 = vrot.lane.b32.xlu1 %v1874_v55, %s1633_s27 }
 0x140   : > { %797 = vxpose.xlu0.b32.cont [2/8] (short) (narrow) %v763_v6, 32 }
 0x143   : > { %978 = vrot.lane.b32.xlu1 %v1882_v58, %s1632_s26 }
 0x144   : > { %798 = vxpose.xlu0.b32.cont [3/8] (short) (narrow) %v768_v7, 32 }
 0x147   : > { %1011 = vrot.lane.b32.xlu1 %v1882_v58, %s1633_s27 }
 0x148   : > { %799 = vxpose.xlu0.b32.cont [4/8] (short) (narrow) %v773_v8, 32 }
 0x14b   : > { %976 = vrot.lane.b32.xlu1 %v1887_v61, %s1632_s26 }
 0x14c   : > { %800 = vxpose.xlu0.b32.cont [5/8] (short) (narrow) %v778_v9, 32 }
 0x14f   : > { %1009 = vrot.lane.b32.xlu1 %v1887_v61, %s1633_s27 }
 0x150   : > { %801 = vxpose.xlu0.b32.cont [6/8] (short) (narrow) %v783_v10, 32 }
 0x153   : > { %982 = vrot.lane.b32.xlu1 %v1895_v0, %s1632_s26 }
 0x154   : > { %802 = vxpose.xlu0.b32.cont [7/8] (short) (narrow) %v788_v11, 32 }
 0x157   : > { %980 = vrot.lane.b32.xlu1 %v1899_v3, %s1632_s26 }
 0x158   : > { %803 = vxpose.xlu0.b32.end [8/8] (short) (narrow) %v793_v12, 32 }
 0x15b   : > { %1013 = vrot.lane.b32.xlu1 %v1899_v3, %s1633_s27 }
 0x15f   : > { %1034 = vrot.lane.b32.xlu1 %v1862_v49, %s1634_s15 }
 0x163   : > { %1036 = vrot.lane.b32.xlu1 %v1857_v46, %s1634_s15 }
 0x164   : > { %v584_v14 = vpop.permute.xlu0 %583 }
 0x165   : > { %v592_v13 = vpop.permute.xlu1 %591  ;;  %1290 = vst.msk [vmem:[%s1820_s25 + $0x48] sm:$0xff] %vm564_vm1, %v584_v14 }
 0x166   : > { %1294 = vst.msk [vmem:[%s1820_s25 + $0x68] sm:$0xff] %vm564_vm1, %v592_v13 }
 0x167   : > { %1038 = vrot.lane.b32.xlu1 %v1874_v55, %s1634_s15 }
 0x168   : > { %v582_v16 = vpop.permute.xlu0 %581 }
 0x169   : > { %v617_v15 = vpop.permute.xlu1 %616  ;;  %1289 = vst.msk [vmem:[%s1820_s25 + $0x40] sm:$0xff] %vm564_vm1, %v582_v16 }
 0x16a   : > { %1298 = vst.msk [vmem:[%s1820_s25 + $0x88] sm:$0xff] %vm564_vm1, %v617_v15 }
 0x16b   : > { %1040 = vrot.lane.b32.xlu1 %v1870_v52, %s1634_s15 }
 0x16c   : > { %v590_v18 = vpop.permute.xlu0 %589 }
 0x16d   : > { %v625_v17 = vpop.permute.xlu1 %624  ;;  %1293 = vst.msk [vmem:[%s1820_s25 + $0x60] sm:$0xff] %vm564_vm1, %v590_v18 }
 0x16e   : > { %1302 = vst.msk [vmem:[%s1820_s25 + $0xa8] sm:$0xff] %vm564_vm1, %v625_v17 }
 0x16f   : > { %1042 = vrot.lane.b32.xlu1 %v1887_v61, %s1634_s15 }
 0x170   : > { %v615_v20 = vpop.permute.xlu0 %614 }
 0x171   : > { %v650_v19 = vpop.permute.xlu1 %649  ;;  %1297 = vst.msk [vmem:[%s1820_s25 + $0x80] sm:$0xff] %vm564_vm1, %v615_v20 }
 0x172   : > { %1306 = vst.msk [vmem:[%s1820_s25 + $0xc8] sm:$0xff] %vm564_vm1, %v650_v19 }
 0x173   : > { %1044 = vrot.lane.b32.xlu1 %v1882_v58, %s1634_s15 }
 0x174   : > { %v623_v22 = vpop.permute.xlu0 %622 }
 0x175   : > { %v658_v21 = vpop.permute.xlu1 %657  ;;  %1301 = vst.msk [vmem:[%s1820_s25 + $0xa0] sm:$0xff] %vm564_vm1, %v623_v22 }
 0x176   : > { %1310 = vst.msk [vmem:[%s1820_s25 + $0xe8] sm:$0xff] %vm564_vm1, %v658_v21 }
 0x177   : > { %1046 = vrot.lane.b32.xlu1 %v1899_v3, %s1634_s15 }
 0x178   : > { %v648_v24 = vpop.permute.xlu0 %647 }
 0x179   : > { %v588_v23 = vpop.permute.xlu1 %587  ;;  %1305 = vst.msk [vmem:[%s1820_s25 + $0xc0] sm:$0xff] %vm564_vm1, %v648_v24 }
 0x17a   : > { %1292 = vst.msk [vmem:[%s1820_s25 + $0x58] sm:$0xff] %vm564_vm1, %v588_v23 }
 0x17b   : > { %1048 = vrot.lane.b32.xlu1 %v1895_v0, %s1634_s15  ;;  %s2056_s15 = scalar_lea.hbm %s2135_s8, %s1366_s29 }
 0x17c   : > { %v656_v26 = vpop.permute.xlu0 %655 }
 0x17d   : > { %v596_v25 = vpop.permute.xlu1 %595  ;;  %1309 = vst.msk [vmem:[%s1820_s25 + $0xe0] sm:$0xff] %vm564_vm1, %v656_v26 }
 0x17e   : > { %1296 = vst.msk [vmem:[%s1820_s25 + $0x78] sm:$0xff] %vm564_vm1, %v596_v25 }
 0x180   : > { %v594_v28 = vpop.permute.xlu0 %593 }
 0x181   : > { %v621_v27 = vpop.permute.xlu1 %620  ;;  %1295 = vst.msk [vmem:[%s1820_s25 + $0x70] sm:$0xff] %vm564_vm1, %v594_v28  ;;  %1015 = vrot.lane.b32.xlu0 %v1895_v0, %s1633_s27 }
 0x182   : > { %1300 = vst.msk [vmem:[%s1820_s25 + $0x98] sm:$0xff] %vm564_vm1, %v621_v27 }
 0x184   : > { %v619_v30 = vpop.permute.xlu0 %618 }
 0x185   : > { %v629_v29 = vpop.permute.xlu1 %628  ;;  %1299 = vst.msk [vmem:[%s1820_s25 + $0x90] sm:$0xff] %vm564_vm1, %v619_v30 }
 0x186   : > { %1304 = vst.msk [vmem:[%s1820_s25 + $0xb8] sm:$0xff] %vm564_vm1, %v629_v29 }
 0x188   : > { %v627_v32 = vpop.permute.xlu0 %626 }
 0x189   : > { %v654_v31 = vpop.permute.xlu1 %653  ;;  %1303 = vst.msk [vmem:[%s1820_s25 + $0xb0] sm:$0xff] %vm564_vm1, %v627_v32 }
 0x18a   : > { %1308 = vst.msk [vmem:[%s1820_s25 + $0xd8] sm:$0xff] %vm564_vm1, %v654_v31 }
 0x18c   : > { %v652_v34 = vpop.permute.xlu0 %651 }
 0x18d   : > { %v662_v33 = vpop.permute.xlu1 %661  ;;  %1307 = vst.msk [vmem:[%s1820_s25 + $0xd0] sm:$0xff] %vm564_vm1, %v652_v34 }
 0x18e   : > { %1312 = vst.msk [vmem:[%s1820_s25 + $0xf8] sm:$0xff] %vm564_vm1, %v662_v33 }
 0x190   : > { %v660_v36 = vpop.permute.xlu0 %659 }
 0x191   : > { %v586_v35 = vpop.permute.xlu1 %585  ;;  %1311 = vst.msk [vmem:[%s1820_s25 + $0xf0] sm:$0xff] %vm564_vm1, %v660_v36 }
 0x192   : > { %1291 = vst.msk [vmem:[%s1820_s25 + $0x50] sm:$0xff] %vm564_vm1, %v586_v35  ;;  %s365_s25 = sand.u32 1, %s1614_s10  }
 0x193   : > { %s1271_s26 = sshll.u32 %s365_s25, 5  ;;  %s2061_s12 = scalar_lea.sflag [#allocation3], %s365_s25 }
 0x194   : > { %s367_s27 = scalar_lea.vmem [#allocation2], %s1271_s26  ;;  %s1556_s26 = sshll.u32 %s1635_s16, 4  ;;  %s1557_s26 = int_to_ptr.vmem [resolvable:$false] %s1556_s26 }
 0x195   : > { %v971_v37 = vpop.permute.xlu1 %970  ;;  %s1107_s28 = sshll.u32 %s367_s27, 4  ;;  %s1558_s20 = scalar_lea.vmem %s1557_s26, 1024  ;;  %s2051_s28 = int_to_ptr.vmem [resolvable:$true] %s1107_s28 }
 0x196   : > { %1335 = vst.msk [vmem:[%s1855_s24 + $0x48] sm:$0xff] %vm564_vm1, %v971_v37  ;;  %s1552_s18 = scalar_lea.vmem %s2051_s28, 512  ;;  %p1559_p2 = scmp.lt.s32.totalorder %s2051_s28, %s1557_s26 }
 0x197   : > { %p1553_p13 = scmp.ne.s32.totalorder %s2051_s28, %s1552_s18  ;;  %p1560_p3 = scmp.lt.s32.totalorder %s1558_s20, %s1552_s18 }
 0x199   : > { %v1004_v38 = vpop.permute.xlu1 %1003  ;;  %p1554_p0 = pnand %p1553_p13, %p1728_p4  ;;  %p1561_p5 = por %p1560_p3, %p1559_p2 }
 0x19a   : > { %1343 = vst.msk [vmem:[%s1855_s24 + $0x88] sm:$0xff] %vm564_vm1, %v1004_v38 }
 0x19b   : > { %p1555_p1 = pneg %p1554_p0 }
 0x19d   : > { %v969_v39 = vpop.permute.xlu1 %968  ;;  %p1562_p6 = pnand %p1561_p5, %p1555_p1 }
 0x19e   : > { %1334 = vst.msk [vmem:[%s1855_s24 + $0x40] sm:$0xff] %vm564_vm1, %v969_v39 }
 0x1a1   : > { %v1002_v40 = vpop.permute.xlu1 %1001 }
 0x1a2   : > { %1342 = vst.msk [vmem:[%s1855_s24 + $0x80] sm:$0xff] %vm564_vm1, %v1002_v40 }
 0x1a5   : > { %v975_v41 = vpop.permute.xlu1 %974 }
 0x1a6   : > { %1337 = vst.msk [vmem:[%s1855_s24 + $0x58] sm:$0xff] %vm564_vm1, %v975_v41 }
 0x1a9   : > { %v1008_v42 = vpop.permute.xlu1 %1007 }
 0x1aa   : > { %1345 = vst.msk [vmem:[%s1855_s24 + $0x98] sm:$0xff] %vm564_vm1, %v1008_v42 }
 0x1ad   : > { %v973_v43 = vpop.permute.xlu1 %972 }
 0x1ae   : > { %1336 = vst.msk [vmem:[%s1855_s24 + $0x50] sm:$0xff] %vm564_vm1, %v973_v43 }
 0x1b1   : > { %v1006_v44 = vpop.permute.xlu1 %1005 }
 0x1b2   : > { %1344 = vst.msk [vmem:[%s1855_s24 + $0x90] sm:$0xff] %vm564_vm1, %v1006_v44 }
 0x1b5   : > { %v979_v45 = vpop.permute.xlu1 %978 }
 0x1b6   : > { %1339 = vst.msk [vmem:[%s1855_s24 + $0x68] sm:$0xff] %vm564_vm1, %v979_v45 }
 0x1b9   : > { %v1012_v46 = vpop.permute.xlu1 %1011 }
 0x1ba   : > { %1347 = vst.msk [vmem:[%s1855_s24 + $0xa8] sm:$0xff] %vm564_vm1, %v1012_v46 }
 0x1bc   : > { %v812_v48 = vpop.trf.xlu0 }
 0x1bd   : > { %v977_v47 = vpop.permute.xlu1 %976  ;;  %829 = vst.msk [vmem:[%s367_s27] sm:$0xff] %vm828_vm2, %v812_v48 }
 0x1be   : > { %1338 = vst.msk [vmem:[%s1855_s24 + $0x60] sm:$0xff] %vm564_vm1, %v977_v47 }
 0x1c0   : > { %v813_v50 = vpop.trf.xlu0 }
 0x1c1   : > { %v1010_v49 = vpop.permute.xlu1 %1009  ;;  %1322 = vst.msk [vmem:[%s367_s27 + $0x8] sm:$0xff] %vm828_vm2, %v813_v50 }
 0x1c2   : > { %1346 = vst.msk [vmem:[%s1855_s24 + $0xa0] sm:$0xff] %vm564_vm1, %v1010_v49 }
 0x1c4   : > { %v814_v52 = vpop.trf.xlu0 }
 0x1c5   : > { %v983_v51 = vpop.permute.xlu1 %982  ;;  %1323 = vst.msk [vmem:[%s367_s27 + $0x10] sm:$0xff] %vm828_vm2, %v814_v52 }
 0x1c6   : > { %1341 = vst.msk [vmem:[%s1855_s24 + $0x78] sm:$0xff] %vm564_vm1, %v983_v51 }
 0x1c8   : > { %v815_v54 = vpop.trf.xlu0 }
 0x1c9   : > { %v981_v53 = vpop.permute.xlu1 %980  ;;  %1324 = vst.msk [vmem:[%s367_s27 + $0x18] sm:$0xff] %vm828_vm2, %v815_v54 }
 0x1ca   : > { %1340 = vst.msk [vmem:[%s1855_s24 + $0x70] sm:$0xff] %vm564_vm1, %v981_v53 }
 0x1cb   : > { %1565 = shalt.err (!%p1562_p6)
}
 0x1cc   : > { %s1566_s25 = scalar_lea.hbm %s2056_s15, 512  ;;  %s1570_s23 = scalar_lea.hbm %s2135_s8, 1024 }
 0x1cd   : > { %p1567_p7 = scmp.ne.s32.totalorder %s2056_s15, %s1566_s25  ;;  %p1571_p11 = scmp.lt.u32.totalorder %s2056_s15, %s2135_s8 }
 0x1ce   : > { %p1572_p12 = scmp.lt.u32.totalorder %s1570_s23, %s1566_s25  ;;  %p1574_p0 = scmp.lt.u32.totalorder %s1566_s25, %s2056_s15 }
 0x1cf   : > { %p1568_p9 = pnand %p1567_p7, %p1728_p4 }
 0x1d0   : > { %p1573_p13 = por %p1572_p12, %p1571_p11 }
 0x1d1   : > { %p1569_p10 = pneg %p1568_p9 }
 0x1d2   : > { %p1575_p1 = por %p1574_p0, %p1573_p13 }
 0x1d4   : > { %p1576_p2 = pnand %p1575_p1, %p1569_p10 }
 0x1d6   : > { %1579 = shalt.err (!%p1576_p2)
}
 0x1d7   : > { %s1636_s18 = smov 128   ;;  %s1637_s20 = smov 8   ;;  %v1014_v55 = vpop.permute.xlu1 %1013 }
 0x1d8   : > { %1491 = dma.vmem_to_hbm [thread:$0]  (%p1728_p4), %s2051_s28, 512, %s2056_s15, %s2061_s12, %s1636_s18, %s1636_s18, %s1637_s20  }
 0x1d9   : > { %1348 = vst.msk [vmem:[%s1855_s24 + $0xb0] sm:$0xff] %vm564_vm1, %v1014_v55 }
 0x1db   : > { %v1035_v56 = vpop.permute.xlu1 %1034 }
 0x1dc   : > { %1350 = vst.msk [vmem:[%s1855_s24 + $0xc0] sm:$0xff] %vm564_vm1, %v1035_v56 }
 0x1df   : > { %v1037_v57 = vpop.permute.xlu1 %1036 }
 0x1e0   : > { %1351 = vst.msk [vmem:[%s1855_s24 + $0xc8] sm:$0xff] %vm564_vm1, %v1037_v57 }
 0x1e3   : > { %v1039_v58 = vpop.permute.xlu1 %1038 }
 0x1e4   : > { %1352 = vst.msk [vmem:[%s1855_s24 + $0xd0] sm:$0xff] %vm564_vm1, %v1039_v58 }
 0x1e7   : > { %v1041_v59 = vpop.permute.xlu1 %1040 }
 0x1e8   : > { %1353 = vst.msk [vmem:[%s1855_s24 + $0xd8] sm:$0xff] %vm564_vm1, %v1041_v59 }
 0x1eb   : > { %v1043_v60 = vpop.permute.xlu1 %1042 }
 0x1ec   : > { %1354 = vst.msk [vmem:[%s1855_s24 + $0xe0] sm:$0xff] %vm564_vm1, %v1043_v60 }
 0x1ef   : > { %v1045_v61 = vpop.permute.xlu1 %1044 }
 0x1f0   : > { %1355 = vst.msk [vmem:[%s1855_s24 + $0xe8] sm:$0xff] %vm564_vm1, %v1045_v61 }
 0x1f3   : > { %v1047_v62 = vpop.permute.xlu1 %1046  ;;  %v1016_v63 = vpop.permute.xlu0 %1015 }
 0x1f4   : > { %1356 = vst.msk [vmem:[%s1855_s24 + $0xf0] sm:$0xff] %vm564_vm1, %v1047_v62  ;;  %1349 = vst.msk [vmem:[%s1855_s24 + $0xb8] sm:$0xff] %vm564_vm1, %v1016_v63 }
 0x1f7   : > { %v1049_v0 = vpop.permute.xlu1 %1048 }
 0x1f8   : > { %1357 = vst.msk [vmem:[%s1855_s24 + $0xf8] sm:$0xff] %vm564_vm1, %v1049_v0 }
 0x1f9 PF: > { %p1497_p4 = scmp.ge.s32.totalorder %s1630_s14, 2  ;;  %s1140_s19 = sand.u32 1, %s1610_s30  }
 0x1fa   : > { %s1141_s28 = scalar_lea.sflag [#allocation3], %s1140_s19 }
 0x1fb   : > { %p1494_p3 = pnand %p1497_p4, %p1735_p8 }
 0x1fd   : > { %1605 = dma.done.wait (!%p1494_p3), %s1141_s28, 512  }
 0x1fe   : > { %1607 = vsyncadd (!%p1494_p3), %s1141_s28, 4294966784  ;;  %s23_s14 = sadd.s32 1, %s1630_s14   ;;  %s2139_s30 = smov %s1614_s10 }
 0x1ff   : > { %p20_p5 = scmp.ge.s32.totalorder %s23_s14, 4   ;;  %s2140_s10 = smov %s1618_s11 }
 0x200   : > { %s2141_s11 = smov %s1741_s22  ;;  %s2142_s12 = smov %s1626_s13 }
 0x201   : > { %s2143_s13 = smov %s2145_s17  ;;  %22 = sbr.rel (!%p20_p5) target bundleno = 4 (0x4), region = 116 }
 0x208   :  { %1159 = vsyncpa [#allocation3], 1 }
 0x209   :  { %1161 = vsyncpa [#allocation3 + $0x1], 1 }

</bundles_post_ra>
